<compile_context>
chip_gen: v5e
topology: v5e:2x2
jax: 0.10.0
libtpu: 0.0.40
codegen_flags: <defaults>
</compile_context>

<pallas_src>
import functools

import jax
import jax.numpy as jnp
from jax.experimental import pallas as pl
from jax.experimental.pallas import tpu as pltpu


# ----------------------------------------------------------------------------
# small helpers
# ----------------------------------------------------------------------------

def _round_up(v, m):
    return ((v + m - 1) // m) * m


def _pick_block(B, target=8):
    """Largest divisor of B <= target, keeping >=2 grid steps when B >= 2."""
    cap = min(target, B)
    if B >= 2:
        cap = min(cap, max(1, B // 2))
    for bt in range(cap, 0, -1):
        if B % bt == 0:
            return bt
    return 1


def _ln(x, g, b, d_real, eps=1e-5):
    # Masked LayerNorm: padded lanes of x are zero, gamma/beta are zero in the
    # padded region, statistics are divided by the REAL feature count, so the
    # result matches nn.LayerNorm on the real lanes and is exactly 0 elsewhere.
    inv = 1.0 / d_real
    mu = jnp.sum(x, axis=-1, keepdims=True) * inv
    ex2 = jnp.sum(x * x, axis=-1, keepdims=True) * inv
    var = jnp.maximum(ex2 - mu * mu, 0.0)
    return (x - mu) * jax.lax.rsqrt(var + eps) * g + b


def _gelu_tanh(x):
    # tanh-approximation GELU (EUP) -- TODO(synk): exact erf as in nn.GELU().
    c = 0.7978845608028654  # sqrt(2/pi)
    return 0.5 * x * (1.0 + jnp.tanh(c * (x + 0.044715 * x * x * x)))


def _dot(a, b):
    # bf16 MXU matmul, f32 accumulation.
    return jnp.dot(a.astype(jnp.bfloat16), b.astype(jnp.bfloat16),
                   preferred_element_type=jnp.float32)


def _buffered_one_supported():
    """Probe whether pipeline_mode=pl.Buffered(1) is accepted on this JAX/Mosaic.

    Buffered(1) halves the VMEM of weight blocks pinned with a constant
    index_map (review item).  Fall back silently to default double-buffering
    if the feature is unavailable so the script always runs.
    """
    try:
        buffered = pl.Buffered(1)

        def k(x_ref, w_ref, o_ref):
            o_ref[...] = x_ref[...] + w_ref[...]

        f = pl.pallas_call(
            k, grid=(2,),
            in_specs=[pl.BlockSpec((8, 128), lambda i: (i, 0)),
                      pl.BlockSpec((8, 128), lambda i: (0, 0),
                                   pipeline_mode=buffered)],
            out_specs=pl.BlockSpec((8, 128), lambda i: (i, 0)),
            out_shape=jax.ShapeDtypeStruct((16, 128), jnp.float32))
        jax.block_until_ready(f(jnp.zeros((16, 128), jnp.float32),
                                jnp.zeros((8, 128), jnp.float32)))
        return True
    except Exception:
        return False


_BUFFERED_ONE = _buffered_one_supported()


def _pinned(shape):
    # Weight/bias block: same block every grid step -> stays VMEM-resident.
    nd = len(shape)
    idx = lambda *_: (0,) * nd
    if _BUFFERED_ONE:
        return pl.BlockSpec(shape, idx, pipeline_mode=pl.Buffered(1))
    return pl.BlockSpec(shape, idx)


# ----------------------------------------------------------------------------
# fused transformer layer:  x + Attn(LN(x)) ;  x + FFN(LN(x))
# ----------------------------------------------------------------------------

def _tx_layer_kernel(x_ref, ln1g_ref, ln1b_ref, wqkv_ref, wout_ref, bout_ref,
                     ln2g_ref, ln2b_ref, w1_ref, b1_ref, w2_ref, b2_ref,
                     o_ref, attn_scr, *, heads, head_dim, d_real, n_real):
    Bt, Np, Dp = x_ref.shape
    inner = heads * head_dim
    M = Bt * Np

    x = x_ref[...].astype(jnp.float32).reshape(M, Dp)

    # --- PreNorm + fused QKV projection: ONE (M, Dp) x (Dp, 3*inner) matmul.
    #     (1/sqrt(head_dim) is pre-folded into the Q columns of w_qkv.)
    y = _ln(x, ln1g_ref[...], ln1b_ref[...], d_real)
    qkv = _dot(y, wqkv_ref[...]).astype(jnp.bfloat16)       # bf16 slab, cast once
    qkv = qkv.reshape(Bt, Np, 3 * inner)

    # --- attention: per-head lane slices, matmuls batched over the Bt
    #     sequences (3-D einsum with a single leading batch dim).  Head outputs
    #     go into an (M, inner) VMEM scratch -> ONE out-projection with K=inner.
    for h in range(heads):                                   # static, small
        sl = slice(h * head_dim, (h + 1) * head_dim)
        q = qkv[:, :, sl]
        k = qkv[:, :, inner + h * head_dim: inner + (h + 1) * head_dim]
        v = qkv[:, :, 2 * inner + h * head_dim: 2 * inner + (h + 1) * head_dim]
        s = jnp.einsum('bqd,bkd->bqk', q, k,
                       preferred_element_type=jnp.float32)   # (Bt, Np, Np)
        if n_real < Np:                                      # mask padded keys
            kid = jax.lax.broadcasted_iota(jnp.int32, s.shape, 2)
            s = jnp.where(kid < n_real, s, -1e30)
        m = jnp.max(s, axis=-1, keepdims=True)
        p = jnp.exp(s - m)
        l = jnp.sum(p, axis=-1, keepdims=True)
        o_h = jnp.einsum('bqk,bkd->bqd', p.astype(jnp.bfloat16), v,
                         preferred_element_type=jnp.float32)
        o_h = o_h * pl.reciprocal(l, approx=True)
        attn_scr[:, sl] = o_h.reshape(M, head_dim).astype(jnp.bfloat16)

    # single full-K output projection + residual
    # (project_out is always applied; matches configs with heads*hd != dim)
    x = x + _dot(attn_scr[...], wout_ref[...]) + bout_ref[...]

    # --- PreNorm + FFN + residual.
    y = _ln(x, ln2g_ref[...], ln2b_ref[...], d_real)
    hdn = _gelu_tanh(_dot(y, w1_ref[...]) + b1_ref[...])
    x = x + _dot(hdn, w2_ref[...]) + b2_ref[...]

    o_ref[...] = x.reshape(Bt, Np, Dp).astype(o_ref.dtype)


def transformer_layer(x, lp, heads, head_dim, d_real, n_real, seq_block=8):
    # x: (B, Np, Dp) bf16 -- B independent (already padded) sequences.
    B, Np, Dp = x.shape
    inner = heads * head_dim
    Hp = lp["ff_w1"].shape[1]
    Bt = _pick_block(B, seq_block)
    M = Bt * Np

    kern = functools.partial(_tx_layer_kernel, heads=heads, head_dim=head_dim,
                             d_real=d_real, n_real=n_real)
    seq_spec = pl.BlockSpec((Bt, Np, Dp), lambda i: (i, 0, 0))

    # explicit VMEM budget: pinned weights + activation blocks + QKV slab +
    # scores, with headroom; capped at v7x's 64 MiB physical VMEM.
    wbytes = sum(int(v.size) * v.dtype.itemsize for v in lp.values())
    abytes = 2 * 2 * (Bt * Np * Dp * 2)                 # in+out blocks, dbl-buffered bf16
    sbytes = (M * 3 * inner * 2 + M * inner * 2         # qkv slab + merged heads (bf16)
              + 2 * Bt * Np * Np * 4                    # scores + probs (f32)
              + M * Hp * 4 + 6 * M * Dp * 4)            # ffn hidden + f32 temporaries
    vmem_limit = int(min(max(2 * (2 * wbytes + abytes + sbytes), 16 << 20),
                         64 << 20))

    return pl.pallas_call(
        kern,
        grid=(B // Bt,),
        in_specs=[
            seq_spec,
            _pinned((1, Dp)), _pinned((1, Dp)),
            _pinned((Dp, 3 * inner)),
            _pinned((inner, Dp)), _pinned((1, Dp)),
            _pinned((1, Dp)), _pinned((1, Dp)),
            _pinned((Dp, Hp)), _pinned((1, Hp)),
            _pinned((Hp, Dp)), _pinned((1, Dp)),
        ],
        out_specs=seq_spec,
        out_shape=jax.ShapeDtypeStruct((B, Np, Dp), x.dtype),
        scratch_shapes=[pltpu.VMEM((M, inner), jnp.bfloat16)],
        compiler_params=pltpu.CompilerParams(
            dimension_semantics=("parallel",),
            vmem_limit_bytes=vmem_limit),
    )(x, lp["ln1_g"], lp["ln1_b"], lp["w_qkv"], lp["w_out"], lp["b_out"],
      lp["ln2_g"], lp["ln2_b"], lp["ff_w1"], lp["ff_b1"], lp["ff_w2"],
      lp["ff_b2"])


# ----------------------------------------------------------------------------
# fused patch embedding:  LN -> Linear -> LN -> + pos_embedding
# (flattened token rows, >=8-row lane-dense tiles)
# ----------------------------------------------------------------------------

def _patch_embed_kernel(x_ref, pos_ref, g1_ref, b1_ref, w_ref, b_ref,
                        g2_ref, b2_ref, o_ref, *, pd_real, d_real):
    x = x_ref[...].astype(jnp.float32)                       # (TM, Pp)
    y = _ln(x, g1_ref[...], b1_ref[...], pd_real)
    y = _dot(y, w_ref[...]) + b_ref[...]                     # (TM, Dp)
    y = _ln(y, g2_ref[...], b2_ref[...], d_real)
    y = y + pos_ref[...]                                     # fused pos add
    o_ref[...] = y.astype(o_ref.dtype)


def patch_embed(x_tok, pos, params, pd_real, d_real):
    # x_tok: (M, Pp) zero-padded patch rows, pos: (M, Dp) pre-broadcast.
    M, Pp = x_tok.shape
    Dp = params["pe_w"].shape[1]
    TM = 256 if M >= 256 else _round_up(M, 8)
    Mp = _round_up(M, TM)
    if Mp > M:
        x_tok = jnp.pad(x_tok, ((0, Mp - M), (0, 0)))
        pos = jnp.pad(pos, ((0, Mp - M), (0, 0)))

    wbytes = int(params["pe_w"].size) * 2 + (Pp + Dp) * 3 * 4
    vmem_limit = int(min(max(4 * (2 * wbytes + 2 * TM * (Pp + 2 * Dp) * 4),
                             16 << 20), 64 << 20))

    out = pl.pallas_call(
        functools.partial(_patch_embed_kernel, pd_real=pd_real, d_real=d_real),
        grid=(Mp // TM,),
        in_specs=[
            pl.BlockSpec((TM, Pp), lambda i: (i, 0)),
            pl.BlockSpec((TM, Dp), lambda i: (i, 0)),
            _pinned((1, Pp)), _pinned((1, Pp)),
            _pinned((Pp, Dp)), _pinned((1, Dp)),
            _pinned((1, Dp)), _pinned((1, Dp)),
        ],
        out_specs=pl.BlockSpec((TM, Dp), lambda i: (i, 0)),
        out_shape=jax.ShapeDtypeStruct((Mp, Dp), jnp.bfloat16),
        compiler_params=pltpu.CompilerParams(
            dimension_semantics=("parallel",),
            vmem_limit_bytes=vmem_limit),
    )(x_tok, pos, params["pe_ln1_g"], params["pe_ln1_b"], params["pe_w"],
      params["pe_b"], params["pe_ln2_g"], params["pe_ln2_b"])
    return out[:M]


# ----------------------------------------------------------------------------
# fused classifier head: LN -> Linear (lane-padded output, sliced outside)
# ----------------------------------------------------------------------------

def _head_kernel(x_ref, g_ref, b_ref, w_ref, bias_ref, o_ref, *, d_real):
    x = x_ref[...].astype(jnp.float32)
    y = _ln(x, g_ref[...], b_ref[...], d_real)
    o_ref[...] = (_dot(y, w_ref[...]) + bias_ref[...]).astype(o_ref.dtype)


def mlp_head(x, params, n_classes, d_real):
    out = pl.pallas_call(
        functools.partial(_head_kernel, d_real=d_real),
        out_shape=jax.ShapeDtypeStruct((x.shape[0], params["head_w"].shape[1]),
                                       jnp.float32),
        compiler_params=pltpu.CompilerParams(vmem_limit_bytes=32 << 20),
    )(x, params["head_ln_g"], params["head_ln_b"], params["head_w"],
      params["head_b"])
    return out[:, :n_classes]


# ----------------------------------------------------------------------------
# parameters (all feature dims zero-padded to multiples of 128)
# ----------------------------------------------------------------------------

def _gamma(real, padded):
    return jnp.zeros((1, padded), jnp.float32).at[:, :real].set(1.0)


def _beta(padded):
    return jnp.zeros((1, padded), jnp.float32)


def _pad_weight(key, real_shape, pad_shape, scale=0.02, col_scale=None):
    w = jax.random.normal(key, real_shape, jnp.float32) * scale
    if col_scale is not None:
        w = w * col_scale
    out = jnp.zeros(pad_shape, jnp.float32)
    out = out.at[:real_shape[0], :real_shape[1]].set(w)
    return out.astype(jnp.bfloat16)


def _init_transformer(key, layers, dim, Dp, heads, head_dim, mlp, Hp):
    inner = heads * head_dim
    attn_scale = head_dim ** (-0.5)
    # fold attention scale into the Q columns of w_qkv (review item)
    qscale = jnp.concatenate([jnp.full((inner,), attn_scale, jnp.float32),
                              jnp.ones((2 * inner,), jnp.float32)])
    out = []
    for _ in range(layers):
        key, k1, k2, k3, k4 = jax.random.split(key, 5)
        out.append(dict(
            ln1_g=_gamma(dim, Dp), ln1_b=_beta(Dp),
            w_qkv=_pad_weight(k1, (dim, 3 * inner), (Dp, 3 * inner),
                              col_scale=qscale),
            w_out=_pad_weight(k2, (inner, dim), (inner, Dp)),
            b_out=_beta(Dp),
            ln2_g=_gamma(dim, Dp), ln2_b=_beta(Dp),
            ff_w1=_pad_weight(k3, (dim, mlp), (Dp, Hp)),
            ff_b1=_beta(Hp),
            ff_w2=_pad_weight(k4, (mlp, dim), (Hp, Dp)),
            ff_b2=_beta(Dp),
        ))
    return out


def init_vivit_params(key, cfg):
    c = cfg
    patch_dim = (c["in_channels"] * c["patch_height"] * c["patch_width"]
                 * c["patch_frame"])
    nf = c["frames"] // c["patch_frame"]
    ni = (c["height"] // c["patch_height"]) * (c["width"] // c["patch_width"])
    dim, heads, hd = c["dimension"], c["heads"], c["head_dimension"]
    mlp, nc = c["mlp_dimension"], c["number_classes"]
    Dp, Pp = _round_up(dim, 128), _round_up(patch_dim, 128)
    Hp, NCp = _round_up(mlp, 128), _round_up(nc, 128)
    keys = jax.random.split(key, 8)

    pos = jnp.zeros((nf, ni, Dp), jnp.float32).at[:, :, :dim].set(
        jax.random.normal(keys[1], (nf, ni, dim), jnp.float32))
    s_cls = jnp.zeros((1, 1, Dp), jnp.float32).at[:, :, :dim].set(
        jax.random.normal(keys[2], (1, 1, dim), jnp.float32))
    t_cls = jnp.zeros((1, 1, Dp), jnp.float32).at[:, :, :dim].set(
        jax.random.normal(keys[3], (1, 1, dim), jnp.float32))

    return dict(
        pe_ln1_g=_gamma(patch_dim, Pp), pe_ln1_b=_beta(Pp),
        pe_w=_pad_weight(keys[0], (patch_dim, dim), (Pp, Dp)),
        pe_b=_beta(Dp),
        pe_ln2_g=_gamma(dim, Dp), pe_ln2_b=_beta(Dp),
        pos_embedding=pos,
        spatial_cls=s_cls, temporal_cls=t_cls,
        spatial=_init_transformer(keys[4], c["layers"], dim, Dp, heads, hd,
                                  mlp, Hp),
        temporal=_init_transformer(keys[5], c["layers"], dim, Dp, heads, hd,
                                   mlp, Hp),
        head_ln_g=_gamma(dim, Dp), head_ln_b=_beta(Dp),
        head_w=_pad_weight(keys[6], (dim, nc), (Dp, NCp)),
        head_b=_beta(NCp),
    )


# ----------------------------------------------------------------------------
# forward
# ----------------------------------------------------------------------------

def vivit_forward(x, params, cfg):
    # x: (b, c, frames, height, width) -- PyTorch NCFHW
    b, c, F, H, W = x.shape
    pf, p1, p2 = cfg["patch_frame"], cfg["patch_height"], cfg["patch_width"]
    f, h, w = F // pf, H // p1, W // p2
    n = h * w
    patch_dim = p1 * p2 * pf * c
    dim = cfg["dimension"]
    heads, head_dim = cfg["heads"], cfg["head_dimension"]
    Pp, Dp = params["pe_w"].shape

    # rearrange 'b c (f pf) (h p1) (w p2) -> (b f n) (p1 p2 pf c)'
    x = x.reshape(b, c, f, pf, h, p1, w, p2)
    x = x.transpose(0, 2, 4, 6, 5, 7, 3, 1)            # b f h w p1 p2 pf c
    x = x.reshape(b * f * n, patch_dim)
    if Pp > patch_dim:
        x = jnp.pad(x, ((0, 0), (0, Pp - patch_dim)))

    # pre-broadcast positional embedding to one row per token (lane-aligned
    # add inside the patch-embed kernel).
    pos = jnp.broadcast_to(params["pos_embedding"][None], (b, f, n, Dp))
    pos = pos.reshape(b * f * n, Dp)

    tok = patch_embed(x, pos, params, patch_dim, dim)   # (b*f*n, Dp) bf16
    tok = tok.reshape(b * f, n, Dp)

    # spatial transformer: prepend cls token, pad sequence to a multiple of 8
    # (padded keys are masked inside the attention kernel).
    n_s = n + 1
    Np_s = _round_up(n_s, 8)
    cls_s = jnp.broadcast_to(params["spatial_cls"].astype(tok.dtype),
                             (b * f, 1, Dp))
    parts = [cls_s, tok]
    if Np_s > n_s:
        parts.append(jnp.zeros((b * f, Np_s - n_s, Dp), tok.dtype))
    xs = jnp.concatenate(parts, axis=1)                 # (b*f, Np_s, Dp) bf16
    for lp in params["spatial"]:
        xs = transformer_layer(xs, lp, heads, head_dim, dim, n_s)

    # temporal transformer over the per-frame spatial cls tokens.
    xt = xs.reshape(b, f, Np_s, Dp)[:, :, 0]            # (b, f, Dp)
    n_t = f + 1
    Np_t = _round_up(n_t, 8)
    cls_t = jnp.broadcast_to(params["temporal_cls"].astype(xt.dtype),
                             (b, 1, Dp))
    parts = [cls_t, xt]
    if Np_t > n_t:
        parts.append(jnp.zeros((b, Np_t - n_t, Dp), xt.dtype))
    xt = jnp.concatenate(parts, axis=1)                 # (b, Np_t, Dp) bf16
    for lp in params["temporal"]:
        xt = transformer_layer(xt, lp, heads, head_dim, dim, n_t)

    pooled = xt[:, 0]                                   # (b, Dp)
    return mlp_head(pooled, params, cfg["number_classes"], dim)


# ----------------------------------------------------------------------------
# main
# ----------------------------------------------------------------------------

if __name__ == "__main__":
    cfg = dict(
        height=8, width=8, frames=4,
        patch_height=4, patch_width=4, patch_frame=2,
        number_classes=5, dimension=32,
        layers=2, heads=2, in_channels=3,
        head_dimension=8, mlp_dimension=16,
    )
    key = jax.random.PRNGKey(0)
    k_params, k_x = jax.random.split(key)
    params = init_vivit_params(k_params, cfg)

    batch = 2
    x = jax.random.normal(
        k_x, (batch, cfg["in_channels"], cfg["frames"], cfg["height"],
              cfg["width"]), dtype=jnp.float32)

    forward = jax.jit(lambda xx, pp: vivit_forward(xx, pp, cfg))
    logits = forward(x, params)
    jax.block_until_ready(logits)
    assert logits.shape == (batch, cfg["number_classes"])
    print("KERNEL_OK")
</pallas_src>

<mosaic_0001>
module attributes {stable_mosaic.version = 11 : i64} {
  func.func @k(%arg0: i32, %arg1: memref<8x128xf32, #tpu.memory_space<vmem>>, %arg2: memref<8x128xf32, #tpu.memory_space<vmem>>, %arg3: memref<8x128xf32, #tpu.memory_space<vmem>>) attributes {dimension_semantics = [#tpu.dimension_semantics<arbitrary>], iteration_bounds = array<i64: 2>, scalar_prefetch = 0 : i64, scratch_operands = 0 : i64, tpu.core_type = #tpu.core_type<tc>, window_params = [{transform_indices = @transform_0, window_bounds = array<i64: 8, 128>}, {pipeline_mode = #tpu.pipeline_mode<synchronous>, transform_indices = @transform_1, window_bounds = array<i64: 8, 128>}, {transform_indices = @transform_2, window_bounds = array<i64: 8, 128>}]} {
    %c0 = arith.constant 0 : index
    %c0_0 = arith.constant 0 : index
    %0 = vector.load %arg1[%c0, %c0_0] : memref<8x128xf32, #tpu.memory_space<vmem>>, vector<8x128xf32>
    %c0_1 = arith.constant 0 : index
    %c0_2 = arith.constant 0 : index
    %1 = vector.load %arg2[%c0_1, %c0_2] : memref<8x128xf32, #tpu.memory_space<vmem>>, vector<8x128xf32>
    %2 = arith.addf %0, %1 : vector<8x128xf32>
    %c0_3 = arith.constant 0 : index
    %c0_4 = arith.constant 0 : index
    %3 = vector.load %arg3[%c0_3, %c0_4] : memref<8x128xf32, #tpu.memory_space<vmem>>, vector<8x128xf32>
    tpu.vector_store %arg3[%c0_3, %c0_4], %2 {strides = array<i32>} : memref<8x128xf32, #tpu.memory_space<vmem>>, vector<8x128xf32>,
    return
  }
  func.func @transform_0(%arg0: i32) -> (i32, i32) {
    %c0_i32 = arith.constant 0 : i32
    %c0_i32_0 = arith.constant 0 : i32
    return %arg0, %c0_i32 : i32, i32
  }
  func.func @transform_1(%arg0: i32) -> (i32, i32) {
    %c0_i32 = arith.constant 0 : i32
    %c0_i32_0 = arith.constant 0 : i32
    %c0_i32_1 = arith.constant 0 : i32
    return %c0_i32, %c0_i32_0 : i32, i32
  }
  func.func @transform_2(%arg0: i32) -> (i32, i32) {
    %c0_i32 = arith.constant 0 : i32
    %c0_i32_0 = arith.constant 0 : i32
    return %arg0, %c0_i32 : i32, i32
  }
}

module attributes {stable_mosaic.version = 11 : i64} {
  func.func @_patch_embed_kernel(%arg0: i32, %arg1: memref<16x128xf32, #tpu.memory_space<vmem>>, %arg2: memref<16x128xf32, #tpu.memory_space<vmem>>, %arg3: memref<1x128xf32, #tpu.memory_space<vmem>>, %arg4: memref<1x128xf32, #tpu.memory_space<vmem>>, %arg5: memref<128x128xbf16, #tpu.memory_space<vmem>>, %arg6: memref<1x128xf32, #tpu.memory_space<vmem>>, %arg7: memref<1x128xf32, #tpu.memory_space<vmem>>, %arg8: memref<1x128xf32, #tpu.memory_space<vmem>>, %arg9: memref<16x128xbf16, #tpu.memory_space<vmem>>) attributes {dimension_semantics = [#tpu.dimension_semantics<parallel>], iteration_bounds = array<i64: 1>, scalar_prefetch = 0 : i64, scratch_operands = 0 : i64, tpu.core_type = #tpu.core_type<tc>, window_params = [{transform_indices = @transform_0, window_bounds = array<i64: 16, 128>}, {transform_indices = @transform_1, window_bounds = array<i64: 16, 128>}, {pipeline_mode = #tpu.pipeline_mode<synchronous>, transform_indices = @transform_2, window_bounds = array<i64: 1, 128>}, {pipeline_mode = #tpu.pipeline_mode<synchronous>, transform_indices = @transform_3, window_bounds = array<i64: 1, 128>}, {pipeline_mode = #tpu.pipeline_mode<synchronous>, transform_indices = @transform_4, window_bounds = array<i64: 128, 128>}, {pipeline_mode = #tpu.pipeline_mode<synchronous>, transform_indices = @transform_5, window_bounds = array<i64: 1, 128>}, {pipeline_mode = #tpu.pipeline_mode<synchronous>, transform_indices = @transform_6, window_bounds = array<i64: 1, 128>}, {pipeline_mode = #tpu.pipeline_mode<synchronous>, transform_indices = @transform_7, window_bounds = array<i64: 1, 128>}, {transform_indices = @transform_8, window_bounds = array<i64: 16, 128>}]} {
    %c0 = arith.constant 0 : index
    %c0_0 = arith.constant 0 : index
    %0 = vector.load %arg1[%c0, %c0_0] : memref<16x128xf32, #tpu.memory_space<vmem>>, vector<16x128xf32>
    %c0_1 = arith.constant 0 : index
    %c0_2 = arith.constant 0 : index
    %1 = vector.load %arg3[%c0_1, %c0_2] : memref<1x128xf32, #tpu.memory_space<vmem>>, vector<1x128xf32>
    %c0_3 = arith.constant 0 : index
    %c0_4 = arith.constant 0 : index
    %2 = vector.load %arg4[%c0_3, %c0_4] : memref<1x128xf32, #tpu.memory_space<vmem>>, vector<1x128xf32>
    %cst = arith.constant dense<0.000000e+00> : vector<16xf32>
    %3 = vector.multi_reduction <add>, %0, %cst [1] : vector<16x128xf32> to vector<16xf32>
    %4 = vector.shape_cast %3 : vector<16xf32> to vector<16x1xf32>
    %cst_5 = arith.constant 0.010416667 : f32
    %5 = vector.broadcast %cst_5 : f32 to vector<16x1xf32>
    %6 = arith.mulf %4, %5 : vector<16x1xf32>
    %7 = arith.mulf %0, %0 : vector<16x128xf32>
    %cst_6 = arith.constant dense<0.000000e+00> : vector<16xf32>
    %8 = vector.multi_reduction <add>, %7, %cst_6 [1] : vector<16x128xf32> to vector<16xf32>
    %9 = vector.shape_cast %8 : vector<16xf32> to vector<16x1xf32>
    %cst_7 = arith.constant 0.010416667 : f32
    %10 = vector.broadcast %cst_7 : f32 to vector<16x1xf32>
    %11 = arith.mulf %9, %10 : vector<16x1xf32>
    %12 = arith.mulf %6, %6 : vector<16x1xf32>
    %13 = arith.subf %11, %12 : vector<16x1xf32>
    %cst_8 = arith.constant 0.000000e+00 : f32
    %14 = vector.broadcast %cst_8 : f32 to vector<16x1xf32>
    %15 = arith.maximumf %13, %14 : vector<16x1xf32>
    %16 = vector.broadcast %6 : vector<16x1xf32> to vector<16x128xf32>
    %17 = arith.subf %0, %16 : vector<16x128xf32>
    %cst_9 = arith.constant 9.99999974E-6 : f32
    %18 = vector.broadcast %cst_9 : f32 to vector<16x1xf32>
    %19 = arith.addf %15, %18 : vector<16x1xf32>
    %20 = math.rsqrt %19 : vector<16x1xf32>
    %21 = vector.broadcast %20 : vector<16x1xf32> to vector<16x128xf32>
    %22 = arith.mulf %17, %21 : vector<16x128xf32>
    %23 = vector.broadcast %1 : vector<1x128xf32> to vector<16x128xf32>
    %24 = arith.mulf %22, %23 : vector<16x128xf32>
    %25 = vector.broadcast %2 : vector<1x128xf32> to vector<16x128xf32>
    %26 = arith.addf %24, %25 : vector<16x128xf32>
    %c0_10 = arith.constant 0 : index
    %c0_11 = arith.constant 0 : index
    %27 = vector.load %arg5[%c0_10, %c0_11] : memref<128x128xbf16, #tpu.memory_space<vmem>>, vector<128x128xbf16>
    %28 = arith.truncf %26 : vector<16x128xf32> to vector<16x128xbf16>
    %cst_12 = arith.constant dense<0.000000e+00> : vector<16x128xf32>
    %29 = tpu.matmul %28, %27, %cst_12 {dimension_numbers = #tpu.dot_dimension_numbers<[1], [0], [0], [1], [0, 0, 1, 1], [], []>} : vector<16x128xbf16>, vector<128x128xbf16>, vector<16x128xf32> -> vector<16x128xf32>
    %c0_13 = arith.constant 0 : index
    %c0_14 = arith.constant 0 : index
    %30 = vector.load %arg6[%c0_13, %c0_14] : memref<1x128xf32, #tpu.memory_space<vmem>>, vector<1x128xf32>
    %31 = vector.broadcast %30 : vector<1x128xf32> to vector<16x128xf32>
    %32 = arith.addf %29, %31 : vector<16x128xf32>
    %c0_15 = arith.constant 0 : index
    %c0_16 = arith.constant 0 : index
    %33 = vector.load %arg7[%c0_15, %c0_16] : memref<1x128xf32, #tpu.memory_space<vmem>>, vector<1x128xf32>
    %c0_17 = arith.constant 0 : index
    %c0_18 = arith.constant 0 : index
    %34 = vector.load %arg8[%c0_17, %c0_18] : memref<1x128xf32, #tpu.memory_space<vmem>>, vector<1x128xf32>
    %cst_19 = arith.constant dense<0.000000e+00> : vector<16xf32>
    %35 = vector.multi_reduction <add>, %32, %cst_19 [1] : vector<16x128xf32> to vector<16xf32>
    %36 = vector.shape_cast %35 : vector<16xf32> to vector<16x1xf32>
    %cst_20 = arith.constant 3.125000e-02 : f32
    %37 = vector.broadcast %cst_20 : f32 to vector<16x1xf32>
    %38 = arith.mulf %36, %37 : vector<16x1xf32>
    %39 = arith.mulf %32, %32 : vector<16x128xf32>
    %cst_21 = arith.constant dense<0.000000e+00> : vector<16xf32>
    %40 = vector.multi_reduction <add>, %39, %cst_21 [1] : vector<16x128xf32> to vector<16xf32>
    %41 = vector.shape_cast %40 : vector<16xf32> to vector<16x1xf32>
    %cst_22 = arith.constant 3.125000e-02 : f32
    %42 = vector.broadcast %cst_22 : f32 to vector<16x1xf32>
    %43 = arith.mulf %41, %42 : vector<16x1xf32>
    %44 = arith.mulf %38, %38 : vector<16x1xf32>
    %45 = arith.subf %43, %44 : vector<16x1xf32>
    %cst_23 = arith.constant 0.000000e+00 : f32
    %46 = vector.broadcast %cst_23 : f32 to vector<16x1xf32>
    %47 = arith.maximumf %45, %46 : vector<16x1xf32>
    %48 = vector.broadcast %38 : vector<16x1xf32> to vector<16x128xf32>
    %49 = arith.subf %32, %48 : vector<16x128xf32>
    %cst_24 = arith.constant 9.99999974E-6 : f32
    %50 = vector.broadcast %cst_24 : f32 to vector<16x1xf32>
    %51 = arith.addf %47, %50 : vector<16x1xf32>
    %52 = math.rsqrt %51 : vector<16x1xf32>
    %53 = vector.broadcast %52 : vector<16x1xf32> to vector<16x128xf32>
    %54 = arith.mulf %49, %53 : vector<16x128xf32>
    %55 = vector.broadcast %33 : vector<1x128xf32> to vector<16x128xf32>
    %56 = arith.mulf %54, %55 : vector<16x128xf32>
    %57 = vector.broadcast %34 : vector<1x128xf32> to vector<16x128xf32>
    %58 = arith.addf %56, %57 : vector<16x128xf32>
    %c0_25 = arith.constant 0 : index
    %c0_26 = arith.constant 0 : index
    %59 = vector.load %arg2[%c0_25, %c0_26] : memref<16x128xf32, #tpu.memory_space<vmem>>, vector<16x128xf32>
    %60 = arith.addf %58, %59 : vector<16x128xf32>
    %61 = arith.truncf %60 : vector<16x128xf32> to vector<16x128xbf16>
    %c0_27 = arith.constant 0 : index
    %c0_28 = arith.constant 0 : index
    %62 = vector.load %arg9[%c0_27, %c0_28] : memref<16x128xbf16, #tpu.memory_space<vmem>>, vector<16x128xbf16>
    tpu.vector_store %arg9[%c0_27, %c0_28], %61 {strides = array<i32>} : memref<16x128xbf16, #tpu.memory_space<vmem>>, vector<16x128xbf16>,
    return
  }
  func.func @transform_0(%arg0: i32) -> (i32, i32) {
    %c0_i32 = arith.constant 0 : i32
    %c0_i32_0 = arith.constant 0 : i32
    return %arg0, %c0_i32 : i32, i32
  }
  func.func @transform_1(%arg0: i32) -> (i32, i32) {
    %c0_i32 = arith.constant 0 : i32
    %c0_i32_0 = arith.constant 0 : i32
    return %arg0, %c0_i32 : i32, i32
  }
  func.func @transform_2(%arg0: i32) -> (i32, i32) {
    %c0_i32 = arith.constant 0 : i32
    %c0_i32_0 = arith.constant 0 : i32
    %c0_i32_1 = arith.constant 0 : i32
    return %c0_i32, %c0_i32_0 : i32, i32
  }
  func.func @transform_3(%arg0: i32) -> (i32, i32) {
    %c0_i32 = arith.constant 0 : i32
    %c0_i32_0 = arith.constant 0 : i32
    %c0_i32_1 = arith.constant 0 : i32
    return %c0_i32, %c0_i32_0 : i32, i32
  }
  func.func @transform_4(%arg0: i32) -> (i32, i32) {
    %c0_i32 = arith.constant 0 : i32
    %c0_i32_0 = arith.constant 0 : i32
    %c0_i32_1 = arith.constant 0 : i32
    return %c0_i32, %c0_i32_0 : i32, i32
  }
  func.func @transform_5(%arg0: i32) -> (i32, i32) {
    %c0_i32 = arith.constant 0 : i32
    %c0_i32_0 = arith.constant 0 : i32
    %c0_i32_1 = arith.constant 0 : i32
    return %c0_i32, %c0_i32_0 : i32, i32
  }
  func.func @transform_6(%arg0: i32) -> (i32, i32) {
    %c0_i32 = arith.constant 0 : i32
    %c0_i32_0 = arith.constant 0 : i32
    %c0_i32_1 = arith.constant 0 : i32
    return %c0_i32, %c0_i32_0 : i32, i32
  }
  func.func @transform_7(%arg0: i32) -> (i32, i32) {
    %c0_i32 = arith.constant 0 : i32
    %c0_i32_0 = arith.constant 0 : i32
    %c0_i32_1 = arith.constant 0 : i32
    return %c0_i32, %c0_i32_0 : i32, i32
  }
  func.func @transform_8(%arg0: i32) -> (i32, i32) {
    %c0_i32 = arith.constant 0 : i32
    %c0_i32_0 = arith.constant 0 : i32
    return %arg0, %c0_i32 : i32, i32
  }
}

module attributes {stable_mosaic.version = 11 : i64} {
  func.func @_tx_layer_kernel(%arg0: i32, %arg1: memref<2x8x128xbf16, #tpu.memory_space<vmem>>, %arg2: memref<1x128xf32, #tpu.memory_space<vmem>>, %arg3: memref<1x128xf32, #tpu.memory_space<vmem>>, %arg4: memref<128x48xbf16, #tpu.memory_space<vmem>>, %arg5: memref<16x128xbf16, #tpu.memory_space<vmem>>, %arg6: memref<1x128xf32, #tpu.memory_space<vmem>>, %arg7: memref<1x128xf32, #tpu.memory_space<vmem>>, %arg8: memref<1x128xf32, #tpu.memory_space<vmem>>, %arg9: memref<128x128xbf16, #tpu.memory_space<vmem>>, %arg10: memref<1x128xf32, #tpu.memory_space<vmem>>, %arg11: memref<128x128xbf16, #tpu.memory_space<vmem>>, %arg12: memref<1x128xf32, #tpu.memory_space<vmem>>, %arg13: memref<2x8x128xbf16, #tpu.memory_space<vmem>>, %arg14: memref<16x16xbf16, #tpu.memory_space<vmem>>) attributes {dimension_semantics = [#tpu.dimension_semantics<parallel>], iteration_bounds = array<i64: 2>, scalar_prefetch = 0 : i64, scratch_operands = 1 : i64, tpu.core_type = #tpu.core_type<tc>, window_params = [{transform_indices = @transform_0, window_bounds = array<i64: 2, 8, 128>}, {pipeline_mode = #tpu.pipeline_mode<synchronous>, transform_indices = @transform_1, window_bounds = array<i64: 1, 128>}, {pipeline_mode = #tpu.pipeline_mode<synchronous>, transform_indices = @transform_2, window_bounds = array<i64: 1, 128>}, {pipeline_mode = #tpu.pipeline_mode<synchronous>, transform_indices = @transform_3, window_bounds = array<i64: 128, 48>}, {pipeline_mode = #tpu.pipeline_mode<synchronous>, transform_indices = @transform_4, window_bounds = array<i64: 16, 128>}, {pipeline_mode = #tpu.pipeline_mode<synchronous>, transform_indices = @transform_5, window_bounds = array<i64: 1, 128>}, {pipeline_mode = #tpu.pipeline_mode<synchronous>, transform_indices = @transform_6, window_bounds = array<i64: 1, 128>}, {pipeline_mode = #tpu.pipeline_mode<synchronous>, transform_indices = @transform_7, window_bounds = array<i64: 1, 128>}, {pipeline_mode = #tpu.pipeline_mode<synchronous>, transform_indices = @transform_8, window_bounds = array<i64: 128, 128>}, {pipeline_mode = #tpu.pipeline_mode<synchronous>, transform_indices = @transform_9, window_bounds = array<i64: 1, 128>}, {pipeline_mode = #tpu.pipeline_mode<synchronous>, transform_indices = @transform_10, window_bounds = array<i64: 128, 128>}, {pipeline_mode = #tpu.pipeline_mode<synchronous>, transform_indices = @transform_11, window_bounds = array<i64: 1, 128>}, {transform_indices = @transform_12, window_bounds = array<i64: 2, 8, 128>}]} {
    %c0 = arith.constant 0 : index
    %c0_0 = arith.constant 0 : index
    %c0_1 = arith.constant 0 : index
    %0 = vector.load %arg1[%c0, %c0_0, %c0_1] : memref<2x8x128xbf16, #tpu.memory_space<vmem>>, vector<2x8x128xbf16>
    %1 = arith.extf %0 : vector<2x8x128xbf16> to vector<2x8x128xf32>
    %2 = vector.shape_cast %1 : vector<2x8x128xf32> to vector<16x128xf32>
    %c0_2 = arith.constant 0 : index
    %c0_3 = arith.constant 0 : index
    %3 = vector.load %arg2[%c0_2, %c0_3] : memref<1x128xf32, #tpu.memory_space<vmem>>, vector<1x128xf32>
    %c0_4 = arith.constant 0 : index
    %c0_5 = arith.constant 0 : index
    %4 = vector.load %arg3[%c0_4, %c0_5] : memref<1x128xf32, #tpu.memory_space<vmem>>, vector<1x128xf32>
    %cst = arith.constant dense<0.000000e+00> : vector<16xf32>
    %5 = vector.multi_reduction <add>, %2, %cst [1] : vector<16x128xf32> to vector<16xf32>
    %6 = vector.shape_cast %5 : vector<16xf32> to vector<16x1xf32>
    %cst_6 = arith.constant 3.125000e-02 : f32
    %7 = vector.broadcast %cst_6 : f32 to vector<16x1xf32>
    %8 = arith.mulf %6, %7 : vector<16x1xf32>
    %9 = arith.mulf %2, %2 : vector<16x128xf32>
    %cst_7 = arith.constant dense<0.000000e+00> : vector<16xf32>
    %10 = vector.multi_reduction <add>, %9, %cst_7 [1] : vector<16x128xf32> to vector<16xf32>
    %11 = vector.shape_cast %10 : vector<16xf32> to vector<16x1xf32>
    %cst_8 = arith.constant 3.125000e-02 : f32
    %12 = vector.broadcast %cst_8 : f32 to vector<16x1xf32>
    %13 = arith.mulf %11, %12 : vector<16x1xf32>
    %14 = arith.mulf %8, %8 : vector<16x1xf32>
    %15 = arith.subf %13, %14 : vector<16x1xf32>
    %cst_9 = arith.constant 0.000000e+00 : f32
    %16 = vector.broadcast %cst_9 : f32 to vector<16x1xf32>
    %17 = arith.maximumf %15, %16 : vector<16x1xf32>
    %18 = vector.broadcast %8 : vector<16x1xf32> to vector<16x128xf32>
    %19 = arith.subf %2, %18 : vector<16x128xf32>
    %cst_10 = arith.constant 9.99999974E-6 : f32
    %20 = vector.broadcast %cst_10 : f32 to vector<16x1xf32>
    %21 = arith.addf %17, %20 : vector<16x1xf32>
    %22 = math.rsqrt %21 : vector<16x1xf32>
    %23 = vector.broadcast %22 : vector<16x1xf32> to vector<16x128xf32>
    %24 = arith.mulf %19, %23 : vector<16x128xf32>
    %25 = vector.broadcast %3 : vector<1x128xf32> to vector<16x128xf32>
    %26 = arith.mulf %24, %25 : vector<16x128xf32>
    %27 = vector.broadcast %4 : vector<1x128xf32> to vector<16x128xf32>
    %28 = arith.addf %26, %27 : vector<16x128xf32>
    %c0_11 = arith.constant 0 : index
    %c0_12 = arith.constant 0 : index
    %29 = vector.load %arg4[%c0_11, %c0_12] : memref<128x48xbf16, #tpu.memory_space<vmem>>, vector<128x48xbf16>
    %30 = arith.truncf %28 : vector<16x128xf32> to vector<16x128xbf16>
    %cst_13 = arith.constant dense<0.000000e+00> : vector<16x48xf32>
    %31 = tpu.matmul %30, %29, %cst_13 {dimension_numbers = #tpu.dot_dimension_numbers<[1], [0], [0], [1], [0, 0, 1, 1], [], []>} : vector<16x128xbf16>, vector<128x48xbf16>, vector<16x48xf32> -> vector<16x48xf32>
    %32 = arith.truncf %31 : vector<16x48xf32> to vector<16x48xbf16>
    %33 = vector.shape_cast %32 : vector<16x48xbf16> to vector<2x8x48xbf16>
    %34 = vector.extract_strided_slice %33 {offsets = [0, 0, 0], sizes = [2, 8, 8], strides = [1, 1, 1]} : vector<2x8x48xbf16> to vector<2x8x8xbf16>
    %35 = vector.extract_strided_slice %33 {offsets = [0, 0, 16], sizes = [2, 8, 8], strides = [1, 1, 1]} : vector<2x8x48xbf16> to vector<2x8x8xbf16>
    %36 = vector.extract_strided_slice %33 {offsets = [0, 0, 32], sizes = [2, 8, 8], strides = [1, 1, 1]} : vector<2x8x48xbf16> to vector<2x8x8xbf16>
    "tpu.trace_start"() <{level = 10 : i32, message = "bqd,bkd->bqk"}> : () -> ()
    %cst_14 = arith.constant dense<0.000000e+00> : vector<2x8x8xf32>
    %37 = tpu.matmul %34, %35, %cst_14 {dimension_numbers = #tpu.dot_dimension_numbers<[2], [2], [1], [1], [0, 0, 0, 1, 1, 1], [0], [0]>} : vector<2x8x8xbf16>, vector<2x8x8xbf16>, vector<2x8x8xf32> -> vector<2x8x8xf32>
    "tpu.trace_stop"() : () -> ()
    %38 = tpu.iota {dimensions = array<i32: 2>} : vector<2x8x8xi32>
    %c5_i32 = arith.constant 5 : i32
    %39 = vector.broadcast %c5_i32 : i32 to vector<2x8x8xi32>
    %40 = arith.cmpi slt, %38, %39 : vector<2x8x8xi32>
    %cst_15 = arith.constant -1.000000e+30 : f32
    %41 = vector.broadcast %cst_15 : f32 to vector<2x8x8xf32>
    %42 = arith.select %40, %37, %41 : vector<2x8x8xi1>, vector<2x8x8xf32>
    %cst_16 = arith.constant dense<0xFF800000> : vector<2x8xf32>
    %43 = vector.multi_reduction <maximumf>, %42, %cst_16 [2] : vector<2x8x8xf32> to vector<2x8xf32>
    %44 = vector.shape_cast %43 : vector<2x8xf32> to vector<2x8x1xf32>
    %45 = vector.broadcast %44 : vector<2x8x1xf32> to vector<2x8x8xf32>
    %46 = arith.subf %42, %45 : vector<2x8x8xf32>
    %47 = math.exp %46 : vector<2x8x8xf32>
    %cst_17 = arith.constant dense<0.000000e+00> : vector<2x8xf32>
    %48 = vector.multi_reduction <add>, %47, %cst_17 [2] : vector<2x8x8xf32> to vector<2x8xf32>
    %49 = vector.shape_cast %48 : vector<2x8xf32> to vector<2x8x1xf32>
    %50 = arith.truncf %47 : vector<2x8x8xf32> to vector<2x8x8xbf16>
    "tpu.trace_start"() <{level = 10 : i32, message = "bqk,bkd->bqd"}> : () -> ()
    %cst_18 = arith.constant dense<0.000000e+00> : vector<2x8x8xf32>
    %51 = tpu.matmul %50, %36, %cst_18 {dimension_numbers = #tpu.dot_dimension_numbers<[2], [1], [1], [2], [0, 0, 0, 1, 1, 2], [0], [0]>} : vector<2x8x8xbf16>, vector<2x8x8xbf16>, vector<2x8x8xf32> -> vector<2x8x8xf32>
    "tpu.trace_stop"() : () -> ()
    %52 = tpu.reciprocal %49 {approx = true} : vector<2x8x1xf32> -> vector<2x8x1xf32>
    %53 = vector.broadcast %52 : vector<2x8x1xf32> to vector<2x8x8xf32>
    %54 = arith.mulf %51, %53 : vector<2x8x8xf32>
    %55 = vector.shape_cast %54 : vector<2x8x8xf32> to vector<16x8xf32>
    %56 = arith.truncf %55 : vector<16x8xf32> to vector<16x8xbf16>
    %c0_19 = arith.constant 0 : index
    %c0_20 = arith.constant 0 : index
    %57 = vector.load %arg14[%c0_19, %c0_20] : memref<16x16xbf16, #tpu.memory_space<vmem>>, vector<16x8xbf16>
    tpu.vector_store %arg14[%c0_19, %c0_20], %56 {strides = array<i32>} : memref<16x16xbf16, #tpu.memory_space<vmem>>, vector<16x8xbf16>,
    %58 = vector.extract_strided_slice %33 {offsets = [0, 0, 8], sizes = [2, 8, 8], strides = [1, 1, 1]} : vector<2x8x48xbf16> to vector<2x8x8xbf16>
    %59 = vector.extract_strided_slice %33 {offsets = [0, 0, 24], sizes = [2, 8, 8], strides = [1, 1, 1]} : vector<2x8x48xbf16> to vector<2x8x8xbf16>
    %60 = vector.extract_strided_slice %33 {offsets = [0, 0, 40], sizes = [2, 8, 8], strides = [1, 1, 1]} : vector<2x8x48xbf16> to vector<2x8x8xbf16>
    "tpu.trace_start"() <{level = 10 : i32, message = "bqd,bkd->bqk"}> : () -> ()
    %cst_21 = arith.constant dense<0.000000e+00> : vector<2x8x8xf32>
    %61 = tpu.matmul %58, %59, %cst_21 {dimension_numbers = #tpu.dot_dimension_numbers<[2], [2], [1], [1], [0, 0, 0, 1, 1, 1], [0], [0]>} : vector<2x8x8xbf16>, vector<2x8x8xbf16>, vector<2x8x8xf32> -> vector<2x8x8xf32>
    "tpu.trace_stop"() : () -> ()
    %62 = tpu.iota {dimensions = array<i32: 2>} : vector<2x8x8xi32>
    %c5_i32_22 = arith.constant 5 : i32
    %63 = vector.broadcast %c5_i32_22 : i32 to vector<2x8x8xi32>
    %64 = arith.cmpi slt, %62, %63 : vector<2x8x8xi32>
    %cst_23 = arith.constant -1.000000e+30 : f32
    %65 = vector.broadcast %cst_23 : f32 to vector<2x8x8xf32>
    %66 = arith.select %64, %61, %65 : vector<2x8x8xi1>, vector<2x8x8xf32>
    %cst_24 = arith.constant dense<0xFF800000> : vector<2x8xf32>
    %67 = vector.multi_reduction <maximumf>, %66, %cst_24 [2] : vector<2x8x8xf32> to vector<2x8xf32>
    %68 = vector.shape_cast %67 : vector<2x8xf32> to vector<2x8x1xf32>
    %69 = vector.broadcast %68 : vector<2x8x1xf32> to vector<2x8x8xf32>
    %70 = arith.subf %66, %69 : vector<2x8x8xf32>
    %71 = math.exp %70 : vector<2x8x8xf32>
    %cst_25 = arith.constant dense<0.000000e+00> : vector<2x8xf32>
    %72 = vector.multi_reduction <add>, %71, %cst_25 [2] : vector<2x8x8xf32> to vector<2x8xf32>
    %73 = vector.shape_cast %72 : vector<2x8xf32> to vector<2x8x1xf32>
    %74 = arith.truncf %71 : vector<2x8x8xf32> to vector<2x8x8xbf16>
    "tpu.trace_start"() <{level = 10 : i32, message = "bqk,bkd->bqd"}> : () -> ()
    %cst_26 = arith.constant dense<0.000000e+00> : vector<2x8x8xf32>
    %75 = tpu.matmul %74, %60, %cst_26 {dimension_numbers = #tpu.dot_dimension_numbers<[2], [1], [1], [2], [0, 0, 0, 1, 1, 2], [0], [0]>} : vector<2x8x8xbf16>, vector<2x8x8xbf16>, vector<2x8x8xf32> -> vector<2x8x8xf32>
    "tpu.trace_stop"() : () -> ()
    %76 = tpu.reciprocal %73 {approx = true} : vector<2x8x1xf32> -> vector<2x8x1xf32>
    %77 = vector.broadcast %76 : vector<2x8x1xf32> to vector<2x8x8xf32>
    %78 = arith.mulf %75, %77 : vector<2x8x8xf32>
    %79 = vector.shape_cast %78 : vector<2x8x8xf32> to vector<16x8xf32>
    %80 = arith.truncf %79 : vector<16x8xf32> to vector<16x8xbf16>
    %c0_27 = arith.constant 0 : index
    %c8 = arith.constant 8 : index
    %81 = vector.load %arg14[%c0_27, %c8] : memref<16x16xbf16, #tpu.memory_space<vmem>>, vector<16x8xbf16>
    tpu.vector_store %arg14[%c0_27, %c8], %80 {strides = array<i32>} : memref<16x16xbf16, #tpu.memory_space<vmem>>, vector<16x8xbf16>,
    %c0_28 = arith.constant 0 : index
    %c0_29 = arith.constant 0 : index
    %82 = vector.load %arg14[%c0_28, %c0_29] : memref<16x16xbf16, #tpu.memory_space<vmem>>, vector<16x16xbf16>
    %c0_30 = arith.constant 0 : index
    %c0_31 = arith.constant 0 : index
    %83 = vector.load %arg5[%c0_30, %c0_31] : memref<16x128xbf16, #tpu.memory_space<vmem>>, vector<16x128xbf16>
    %cst_32 = arith.constant dense<0.000000e+00> : vector<16x128xf32>
    %84 = tpu.matmul %82, %83, %cst_32 {dimension_numbers = #tpu.dot_dimension_numbers<[1], [0], [0], [1], [0, 0, 1, 1], [], []>} : vector<16x16xbf16>, vector<16x128xbf16>, vector<16x128xf32> -> vector<16x128xf32>
    %85 = arith.addf %2, %84 : vector<16x128xf32>
    %c0_33 = arith.constant 0 : index
    %c0_34 = arith.constant 0 : index
    %86 = vector.load %arg6[%c0_33, %c0_34] : memref<1x128xf32, #tpu.memory_space<vmem>>, vector<1x128xf32>
    %87 = vector.broadcast %86 : vector<1x128xf32> to vector<16x128xf32>
    %88 = arith.addf %85, %87 : vector<16x128xf32>
    %c0_35 = arith.constant 0 : index
    %c0_36 = arith.constant 0 : index
    %89 = vector.load %arg7[%c0_35, %c0_36] : memref<1x128xf32, #tpu.memory_space<vmem>>, vector<1x128xf32>
    %c0_37 = arith.constant 0 : index
    %c0_38 = arith.constant 0 : index
    %90 = vector.load %arg8[%c0_37, %c0_38] : memref<1x128xf32, #tpu.memory_space<vmem>>, vector<1x128xf32>
    %cst_39 = arith.constant dense<0.000000e+00> : vector<16xf32>
    %91 = vector.multi_reduction <add>, %88, %cst_39 [1] : vector<16x128xf32> to vector<16xf32>
    %92 = vector.shape_cast %91 : vector<16xf32> to vector<16x1xf32>
    %cst_40 = arith.constant 3.125000e-02 : f32
    %93 = vector.broadcast %cst_40 : f32 to vector<16x1xf32>
    %94 = arith.mulf %92, %93 : vector<16x1xf32>
    %95 = arith.mulf %88, %88 : vector<16x128xf32>
    %cst_41 = arith.constant dense<0.000000e+00> : vector<16xf32>
    %96 = vector.multi_reduction <add>, %95, %cst_41 [1] : vector<16x128xf32> to vector<16xf32>
    %97 = vector.shape_cast %96 : vector<16xf32> to vector<16x1xf32>
    %cst_42 = arith.constant 3.125000e-02 : f32
    %98 = vector.broadcast %cst_42 : f32 to vector<16x1xf32>
    %99 = arith.mulf %97, %98 : vector<16x1xf32>
    %100 = arith.mulf %94, %94 : vector<16x1xf32>
    %101 = arith.subf %99, %100 : vector<16x1xf32>
    %cst_43 = arith.constant 0.000000e+00 : f32
    %102 = vector.broadcast %cst_43 : f32 to vector<16x1xf32>
    %103 = arith.maximumf %101, %102 : vector<16x1xf32>
    %104 = vector.broadcast %94 : vector<16x1xf32> to vector<16x128xf32>
    %105 = arith.subf %88, %104 : vector<16x128xf32>
    %cst_44 = arith.constant 9.99999974E-6 : f32
    %106 = vector.broadcast %cst_44 : f32 to vector<16x1xf32>
    %107 = arith.addf %103, %106 : vector<16x1xf32>
    %108 = math.rsqrt %107 : vector<16x1xf32>
    %109 = vector.broadcast %108 : vector<16x1xf32> to vector<16x128xf32>
    %110 = arith.mulf %105, %109 : vector<16x128xf32>
    %111 = vector.broadcast %89 : vector<1x128xf32> to vector<16x128xf32>
    %112 = arith.mulf %110, %111 : vector<16x128xf32>
    %113 = vector.broadcast %90 : vector<1x128xf32> to vector<16x128xf32>
    %114 = arith.addf %112, %113 : vector<16x128xf32>
    %c0_45 = arith.constant 0 : index
    %c0_46 = arith.constant 0 : index
    %115 = vector.load %arg9[%c0_45, %c0_46] : memref<128x128xbf16, #tpu.memory_space<vmem>>, vector<128x128xbf16>
    %116 = arith.truncf %114 : vector<16x128xf32> to vector<16x128xbf16>
    %cst_47 = arith.constant dense<0.000000e+00> : vector<16x128xf32>
    %117 = tpu.matmul %116, %115, %cst_47 {dimension_numbers = #tpu.dot_dimension_numbers<[1], [0], [0], [1], [0, 0, 1, 1], [], []>} : vector<16x128xbf16>, vector<128x128xbf16>, vector<16x128xf32> -> vector<16x128xf32>
    %c0_48 = arith.constant 0 : index
    %c0_49 = arith.constant 0 : index
    %118 = vector.load %arg10[%c0_48, %c0_49] : memref<1x128xf32, #tpu.memory_space<vmem>>, vector<1x128xf32>
    %119 = vector.broadcast %118 : vector<1x128xf32> to vector<16x128xf32>
    %120 = arith.addf %117, %119 : vector<16x128xf32>
    %cst_50 = arith.constant 5.000000e-01 : f32
    %121 = vector.broadcast %cst_50 : f32 to vector<16x128xf32>
    %122 = arith.mulf %121, %120 : vector<16x128xf32>
    %cst_51 = arith.constant 4.471500e-02 : f32
    %123 = vector.broadcast %cst_51 : f32 to vector<16x128xf32>
    %124 = arith.mulf %123, %120 : vector<16x128xf32>
    %125 = arith.mulf %124, %120 : vector<16x128xf32>
    %126 = arith.mulf %125, %120 : vector<16x128xf32>
    %127 = arith.addf %120, %126 : vector<16x128xf32>
    %cst_52 = arith.constant 0.797884583 : f32
    %128 = vector.broadcast %cst_52 : f32 to vector<16x128xf32>
    %129 = arith.mulf %128, %127 : vector<16x128xf32>
    %130 = math.tanh %129 : vector<16x128xf32>
    %cst_53 = arith.constant 1.000000e+00 : f32
    %131 = vector.broadcast %cst_53 : f32 to vector<16x128xf32>
    %132 = arith.addf %131, %130 : vector<16x128xf32>
    %133 = arith.mulf %122, %132 : vector<16x128xf32>
    %c0_54 = arith.constant 0 : index
    %c0_55 = arith.constant 0 : index
    %134 = vector.load %arg11[%c0_54, %c0_55] : memref<128x128xbf16, #tpu.memory_space<vmem>>, vector<128x128xbf16>
    %135 = arith.truncf %133 : vector<16x128xf32> to vector<16x128xbf16>
    %cst_56 = arith.constant dense<0.000000e+00> : vector<16x128xf32>
    %136 = tpu.matmul %135, %134, %cst_56 {dimension_numbers = #tpu.dot_dimension_numbers<[1], [0], [0], [1], [0, 0, 1, 1], [], []>} : vector<16x128xbf16>, vector<128x128xbf16>, vector<16x128xf32> -> vector<16x128xf32>
    %137 = arith.addf %88, %136 : vector<16x128xf32>
    %c0_57 = arith.constant 0 : index
    %c0_58 = arith.constant 0 : index
    %138 = vector.load %arg12[%c0_57, %c0_58] : memref<1x128xf32, #tpu.memory_space<vmem>>, vector<1x128xf32>
    %139 = vector.broadcast %138 : vector<1x128xf32> to vector<16x128xf32>
    %140 = arith.addf %137, %139 : vector<16x128xf32>
    %141 = vector.shape_cast %140 : vector<16x128xf32> to vector<2x8x128xf32>
    %142 = arith.truncf %141 : vector<2x8x128xf32> to vector<2x8x128xbf16>
    %c0_59 = arith.constant 0 : index
    %c0_60 = arith.constant 0 : index
    %c0_61 = arith.constant 0 : index
    %143 = vector.load %arg13[%c0_59, %c0_60, %c0_61] : memref<2x8x128xbf16, #tpu.memory_space<vmem>>, vector<2x8x128xbf16>
    tpu.vector_store %arg13[%c0_59, %c0_60, %c0_61], %142 {strides = array<i32>} : memref<2x8x128xbf16, #tpu.memory_space<vmem>>, vector<2x8x128xbf16>,
    return
  }
  func.func @transform_0(%arg0: i32) -> (i32, i32, i32) {
    %c0_i32 = arith.constant 0 : i32
    %c0_i32_0 = arith.constant 0 : i32
    %c0_i32_1 = arith.constant 0 : i32
    return %arg0, %c0_i32, %c0_i32_0 : i32, i32, i32
  }
  func.func @transform_1(%arg0: i32) -> (i32, i32) {
    %c0_i32 = arith.constant 0 : i32
    %c0_i32_0 = arith.constant 0 : i32
    %c0_i32_1 = arith.constant 0 : i32
    return %c0_i32, %c0_i32_0 : i32, i32
  }
  func.func @transform_2(%arg0: i32) -> (i32, i32) {
    %c0_i32 = arith.constant 0 : i32
    %c0_i32_0 = arith.constant 0 : i32
    %c0_i32_1 = arith.constant 0 : i32
    return %c0_i32, %c0_i32_0 : i32, i32
  }
  func.func @transform_3(%arg0: i32) -> (i32, i32) {
    %c0_i32 = arith.constant 0 : i32
    %c0_i32_0 = arith.constant 0 : i32
    %c0_i32_1 = arith.constant 0 : i32
    return %c0_i32, %c0_i32_0 : i32, i32
  }
  func.func @transform_4(%arg0: i32) -> (i32, i32) {
    %c0_i32 = arith.constant 0 : i32
    %c0_i32_0 = arith.constant 0 : i32
    %c0_i32_1 = arith.constant 0 : i32
    return %c0_i32, %c0_i32_0 : i32, i32
  }
  func.func @transform_5(%arg0: i32) -> (i32, i32) {
    %c0_i32 = arith.constant 0 : i32
    %c0_i32_0 = arith.constant 0 : i32
    %c0_i32_1 = arith.constant 0 : i32
    return %c0_i32, %c0_i32_0 : i32, i32
  }
  func.func @transform_6(%arg0: i32) -> (i32, i32) {
    %c0_i32 = arith.constant 0 : i32
    %c0_i32_0 = arith.constant 0 : i32
    %c0_i32_1 = arith.constant 0 : i32
    return %c0_i32, %c0_i32_0 : i32, i32
  }
  func.func @transform_7(%arg0: i32) -> (i32, i32) {
    %c0_i32 = arith.constant 0 : i32
    %c0_i32_0 = arith.constant 0 : i32
    %c0_i32_1 = arith.constant 0 : i32
    return %c0_i32, %c0_i32_0 : i32, i32
  }
  func.func @transform_8(%arg0: i32) -> (i32, i32) {
    %c0_i32 = arith.constant 0 : i32
    %c0_i32_0 = arith.constant 0 : i32
    %c0_i32_1 = arith.constant 0 : i32
    return %c0_i32, %c0_i32_0 : i32, i32
  }
  func.func @transform_9(%arg0: i32) -> (i32, i32) {
    %c0_i32 = arith.constant 0 : i32
    %c0_i32_0 = arith.constant 0 : i32
    %c0_i32_1 = arith.constant 0 : i32
    return %c0_i32, %c0_i32_0 : i32, i32
  }
  func.func @transform_10(%arg0: i32) -> (i32, i32) {
    %c0_i32 = arith.constant 0 : i32
    %c0_i32_0 = arith.constant 0 : i32
    %c0_i32_1 = arith.constant 0 : i32
    return %c0_i32, %c0_i32_0 : i32, i32
  }
  func.func @transform_11(%arg0: i32) -> (i32, i32) {
    %c0_i32 = arith.constant 0 : i32
    %c0_i32_0 = arith.constant 0 : i32
    %c0_i32_1 = arith.constant 0 : i32
    return %c0_i32, %c0_i32_0 : i32, i32
  }
  func.func @transform_12(%arg0: i32) -> (i32, i32, i32) {
    %c0_i32 = arith.constant 0 : i32
    %c0_i32_0 = arith.constant 0 : i32
    %c0_i32_1 = arith.constant 0 : i32
    return %arg0, %c0_i32, %c0_i32_0 : i32, i32, i32
  }
}

module attributes {stable_mosaic.version = 11 : i64} {
  func.func @_head_kernel(%arg0: memref<2x128xbf16, #tpu.memory_space<vmem>>, %arg1: memref<1x128xf32, #tpu.memory_space<vmem>>, %arg2: memref<1x128xf32, #tpu.memory_space<vmem>>, %arg3: memref<128x128xbf16, #tpu.memory_space<vmem>>, %arg4: memref<1x128xf32, #tpu.memory_space<vmem>>, %arg5: memref<2x128xf32, #tpu.memory_space<vmem>>) attributes {dimension_semantics = [], scalar_prefetch = 0 : i64, scratch_operands = 0 : i64, tpu.core_type = #tpu.core_type<tc>} {
    %c0 = arith.constant 0 : index
    %c0_0 = arith.constant 0 : index
    %0 = vector.load %arg0[%c0, %c0_0] : memref<2x128xbf16, #tpu.memory_space<vmem>>, vector<2x128xbf16>
    %1 = arith.extf %0 : vector<2x128xbf16> to vector<2x128xf32>
    %c0_1 = arith.constant 0 : index
    %c0_2 = arith.constant 0 : index
    %2 = vector.load %arg1[%c0_1, %c0_2] : memref<1x128xf32, #tpu.memory_space<vmem>>, vector<1x128xf32>
    %c0_3 = arith.constant 0 : index
    %c0_4 = arith.constant 0 : index
    %3 = vector.load %arg2[%c0_3, %c0_4] : memref<1x128xf32, #tpu.memory_space<vmem>>, vector<1x128xf32>
    %cst = arith.constant dense<0.000000e+00> : vector<2xf32>
    %4 = vector.multi_reduction <add>, %1, %cst [1] : vector<2x128xf32> to vector<2xf32>
    %5 = vector.shape_cast %4 : vector<2xf32> to vector<2x1xf32>
    %cst_5 = arith.constant 3.125000e-02 : f32
    %6 = vector.broadcast %cst_5 : f32 to vector<2x1xf32>
    %7 = arith.mulf %5, %6 : vector<2x1xf32>
    %8 = arith.mulf %1, %1 : vector<2x128xf32>
    %cst_6 = arith.constant dense<0.000000e+00> : vector<2xf32>
    %9 = vector.multi_reduction <add>, %8, %cst_6 [1] : vector<2x128xf32> to vector<2xf32>
    %10 = vector.shape_cast %9 : vector<2xf32> to vector<2x1xf32>
    %cst_7 = arith.constant 3.125000e-02 : f32
    %11 = vector.broadcast %cst_7 : f32 to vector<2x1xf32>
    %12 = arith.mulf %10, %11 : vector<2x1xf32>
    %13 = arith.mulf %7, %7 : vector<2x1xf32>
    %14 = arith.subf %12, %13 : vector<2x1xf32>
    %cst_8 = arith.constant 0.000000e+00 : f32
    %15 = vector.broadcast %cst_8 : f32 to vector<2x1xf32>
    %16 = arith.maximumf %14, %15 : vector<2x1xf32>
    %17 = vector.broadcast %7 : vector<2x1xf32> to vector<2x128xf32>
    %18 = arith.subf %1, %17 : vector<2x128xf32>
    %cst_9 = arith.constant 9.99999974E-6 : f32
    %19 = vector.broadcast %cst_9 : f32 to vector<2x1xf32>
    %20 = arith.addf %16, %19 : vector<2x1xf32>
    %21 = math.rsqrt %20 : vector<2x1xf32>
    %22 = vector.broadcast %21 : vector<2x1xf32> to vector<2x128xf32>
    %23 = arith.mulf %18, %22 : vector<2x128xf32>
    %24 = vector.broadcast %2 : vector<1x128xf32> to vector<2x128xf32>
    %25 = arith.mulf %23, %24 : vector<2x128xf32>
    %26 = vector.broadcast %3 : vector<1x128xf32> to vector<2x128xf32>
    %27 = arith.addf %25, %26 : vector<2x128xf32>
    %c0_10 = arith.constant 0 : index
    %c0_11 = arith.constant 0 : index
    %28 = vector.load %arg3[%c0_10, %c0_11] : memref<128x128xbf16, #tpu.memory_space<vmem>>, vector<128x128xbf16>
    %29 = arith.truncf %27 : vector<2x128xf32> to vector<2x128xbf16>
    %cst_12 = arith.constant dense<0.000000e+00> : vector<2x128xf32>
    %30 = tpu.matmul %29, %28, %cst_12 {dimension_numbers = #tpu.dot_dimension_numbers<[1], [0], [0], [1], [0, 0, 1, 1], [], []>} : vector<2x128xbf16>, vector<128x128xbf16>, vector<2x128xf32> -> vector<2x128xf32>
    %c0_13 = arith.constant 0 : index
    %c0_14 = arith.constant 0 : index
    %31 = vector.load %arg4[%c0_13, %c0_14] : memref<1x128xf32, #tpu.memory_space<vmem>>, vector<1x128xf32>
    %32 = vector.broadcast %31 : vector<1x128xf32> to vector<2x128xf32>
    %33 = arith.addf %30, %32 : vector<2x128xf32>
    %c0_15 = arith.constant 0 : index
    %c0_16 = arith.constant 0 : index
    %34 = vector.load %arg5[%c0_15, %c0_16] : memref<2x128xf32, #tpu.memory_space<vmem>>, vector<2x128xf32>
    tpu.vector_store %arg5[%c0_15, %c0_16], %33 {strides = array<i32>} : memref<2x128xf32, #tpu.memory_space<vmem>>, vector<2x128xf32>,
    return
  }
}

module attributes {stable_mosaic.version = 11 : i64} {
  func.func @_tx_layer_kernel(%arg0: i32, %arg1: memref<1x8x128xbf16, #tpu.memory_space<vmem>>, %arg2: memref<1x128xf32, #tpu.memory_space<vmem>>, %arg3: memref<1x128xf32, #tpu.memory_space<vmem>>, %arg4: memref<128x48xbf16, #tpu.memory_space<vmem>>, %arg5: memref<16x128xbf16, #tpu.memory_space<vmem>>, %arg6: memref<1x128xf32, #tpu.memory_space<vmem>>, %arg7: memref<1x128xf32, #tpu.memory_space<vmem>>, %arg8: memref<1x128xf32, #tpu.memory_space<vmem>>, %arg9: memref<128x128xbf16, #tpu.memory_space<vmem>>, %arg10: memref<1x128xf32, #tpu.memory_space<vmem>>, %arg11: memref<128x128xbf16, #tpu.memory_space<vmem>>, %arg12: memref<1x128xf32, #tpu.memory_space<vmem>>, %arg13: memref<1x8x128xbf16, #tpu.memory_space<vmem>>, %arg14: memref<8x16xbf16, #tpu.memory_space<vmem>>) attributes {dimension_semantics = [#tpu.dimension_semantics<parallel>], iteration_bounds = array<i64: 2>, scalar_prefetch = 0 : i64, scratch_operands = 1 : i64, tpu.core_type = #tpu.core_type<tc>, window_params = [{transform_indices = @transform_0, window_bounds = array<i64: 1, 8, 128>}, {pipeline_mode = #tpu.pipeline_mode<synchronous>, transform_indices = @transform_1, window_bounds = array<i64: 1, 128>}, {pipeline_mode = #tpu.pipeline_mode<synchronous>, transform_indices = @transform_2, window_bounds = array<i64: 1, 128>}, {pipeline_mode = #tpu.pipeline_mode<synchronous>, transform_indices = @transform_3, window_bounds = array<i64: 128, 48>}, {pipeline_mode = #tpu.pipeline_mode<synchronous>, transform_indices = @transform_4, window_bounds = array<i64: 16, 128>}, {pipeline_mode = #tpu.pipeline_mode<synchronous>, transform_indices = @transform_5, window_bounds = array<i64: 1, 128>}, {pipeline_mode = #tpu.pipeline_mode<synchronous>, transform_indices = @transform_6, window_bounds = array<i64: 1, 128>}, {pipeline_mode = #tpu.pipeline_mode<synchronous>, transform_indices = @transform_7, window_bounds = array<i64: 1, 128>}, {pipeline_mode = #tpu.pipeline_mode<synchronous>, transform_indices = @transform_8, window_bounds = array<i64: 128, 128>}, {pipeline_mode = #tpu.pipeline_mode<synchronous>, transform_indices = @transform_9, window_bounds = array<i64: 1, 128>}, {pipeline_mode = #tpu.pipeline_mode<synchronous>, transform_indices = @transform_10, window_bounds = array<i64: 128, 128>}, {pipeline_mode = #tpu.pipeline_mode<synchronous>, transform_indices = @transform_11, window_bounds = array<i64: 1, 128>}, {transform_indices = @transform_12, window_bounds = array<i64: 1, 8, 128>}]} {
    %c0 = arith.constant 0 : index
    %c0_0 = arith.constant 0 : index
    %c0_1 = arith.constant 0 : index
    %0 = vector.load %arg1[%c0, %c0_0, %c0_1] : memref<1x8x128xbf16, #tpu.memory_space<vmem>>, vector<1x8x128xbf16>
    %1 = arith.extf %0 : vector<1x8x128xbf16> to vector<1x8x128xf32>
    %2 = vector.shape_cast %1 : vector<1x8x128xf32> to vector<8x128xf32>
    %c0_2 = arith.constant 0 : index
    %c0_3 = arith.constant 0 : index
    %3 = vector.load %arg2[%c0_2, %c0_3] : memref<1x128xf32, #tpu.memory_space<vmem>>, vector<1x128xf32>
    %c0_4 = arith.constant 0 : index
    %c0_5 = arith.constant 0 : index
    %4 = vector.load %arg3[%c0_4, %c0_5] : memref<1x128xf32, #tpu.memory_space<vmem>>, vector<1x128xf32>
    %cst = arith.constant dense<0.000000e+00> : vector<8xf32>
    %5 = vector.multi_reduction <add>, %2, %cst [1] : vector<8x128xf32> to vector<8xf32>
    %6 = vector.shape_cast %5 : vector<8xf32> to vector<8x1xf32>
    %cst_6 = arith.constant 3.125000e-02 : f32
    %7 = vector.broadcast %cst_6 : f32 to vector<8x1xf32>
    %8 = arith.mulf %6, %7 : vector<8x1xf32>
    %9 = arith.mulf %2, %2 : vector<8x128xf32>
    %cst_7 = arith.constant dense<0.000000e+00> : vector<8xf32>
    %10 = vector.multi_reduction <add>, %9, %cst_7 [1] : vector<8x128xf32> to vector<8xf32>
    %11 = vector.shape_cast %10 : vector<8xf32> to vector<8x1xf32>
    %cst_8 = arith.constant 3.125000e-02 : f32
    %12 = vector.broadcast %cst_8 : f32 to vector<8x1xf32>
    %13 = arith.mulf %11, %12 : vector<8x1xf32>
    %14 = arith.mulf %8, %8 : vector<8x1xf32>
    %15 = arith.subf %13, %14 : vector<8x1xf32>
    %cst_9 = arith.constant 0.000000e+00 : f32
    %16 = vector.broadcast %cst_9 : f32 to vector<8x1xf32>
    %17 = arith.maximumf %15, %16 : vector<8x1xf32>
    %18 = vector.broadcast %8 : vector<8x1xf32> to vector<8x128xf32>
    %19 = arith.subf %2, %18 : vector<8x128xf32>
    %cst_10 = arith.constant 9.99999974E-6 : f32
    %20 = vector.broadcast %cst_10 : f32 to vector<8x1xf32>
    %21 = arith.addf %17, %20 : vector<8x1xf32>
    %22 = math.rsqrt %21 : vector<8x1xf32>
    %23 = vector.broadcast %22 : vector<8x1xf32> to vector<8x128xf32>
    %24 = arith.mulf %19, %23 : vector<8x128xf32>
    %25 = vector.broadcast %3 : vector<1x128xf32> to vector<8x128xf32>
    %26 = arith.mulf %24, %25 : vector<8x128xf32>
    %27 = vector.broadcast %4 : vector<1x128xf32> to vector<8x128xf32>
    %28 = arith.addf %26, %27 : vector<8x128xf32>
    %c0_11 = arith.constant 0 : index
    %c0_12 = arith.constant 0 : index
    %29 = vector.load %arg4[%c0_11, %c0_12] : memref<128x48xbf16, #tpu.memory_space<vmem>>, vector<128x48xbf16>
    %30 = arith.truncf %28 : vector<8x128xf32> to vector<8x128xbf16>
    %cst_13 = arith.constant dense<0.000000e+00> : vector<8x48xf32>
    %31 = tpu.matmul %30, %29, %cst_13 {dimension_numbers = #tpu.dot_dimension_numbers<[1], [0], [0], [1], [0, 0, 1, 1], [], []>} : vector<8x128xbf16>, vector<128x48xbf16>, vector<8x48xf32> -> vector<8x48xf32>
    %32 = arith.truncf %31 : vector<8x48xf32> to vector<8x48xbf16>
    %33 = vector.shape_cast %32 : vector<8x48xbf16> to vector<1x8x48xbf16>
    %34 = vector.extract_strided_slice %33 {offsets = [0, 0, 0], sizes = [1, 8, 8], strides = [1, 1, 1]} : vector<1x8x48xbf16> to vector<1x8x8xbf16>
    %35 = vector.extract_strided_slice %33 {offsets = [0, 0, 16], sizes = [1, 8, 8], strides = [1, 1, 1]} : vector<1x8x48xbf16> to vector<1x8x8xbf16>
    %36 = vector.extract_strided_slice %33 {offsets = [0, 0, 32], sizes = [1, 8, 8], strides = [1, 1, 1]} : vector<1x8x48xbf16> to vector<1x8x8xbf16>
    "tpu.trace_start"() <{level = 10 : i32, message = "bqd,bkd->bqk"}> : () -> ()
    %cst_14 = arith.constant dense<0.000000e+00> : vector<1x8x8xf32>
    %37 = tpu.matmul %34, %35, %cst_14 {dimension_numbers = #tpu.dot_dimension_numbers<[2], [2], [1], [1], [0, 0, 0, 1, 1, 1], [0], [0]>} : vector<1x8x8xbf16>, vector<1x8x8xbf16>, vector<1x8x8xf32> -> vector<1x8x8xf32>
    "tpu.trace_stop"() : () -> ()
    %38 = tpu.iota {dimensions = array<i32: 2>} : vector<1x8x8xi32>
    %c3_i32 = arith.constant 3 : i32
    %39 = vector.broadcast %c3_i32 : i32 to vector<1x8x8xi32>
    %40 = arith.cmpi slt, %38, %39 : vector<1x8x8xi32>
    %cst_15 = arith.constant -1.000000e+30 : f32
    %41 = vector.broadcast %cst_15 : f32 to vector<1x8x8xf32>
    %42 = arith.select %40, %37, %41 : vector<1x8x8xi1>, vector<1x8x8xf32>
    %cst_16 = arith.constant dense<0xFF800000> : vector<1x8xf32>
    %43 = vector.multi_reduction <maximumf>, %42, %cst_16 [2] : vector<1x8x8xf32> to vector<1x8xf32>
    %44 = vector.shape_cast %43 : vector<1x8xf32> to vector<1x8x1xf32>
    %45 = vector.broadcast %44 : vector<1x8x1xf32> to vector<1x8x8xf32>
    %46 = arith.subf %42, %45 : vector<1x8x8xf32>
    %47 = math.exp %46 : vector<1x8x8xf32>
    %cst_17 = arith.constant dense<0.000000e+00> : vector<1x8xf32>
    %48 = vector.multi_reduction <add>, %47, %cst_17 [2] : vector<1x8x8xf32> to vector<1x8xf32>
    %49 = vector.shape_cast %48 : vector<1x8xf32> to vector<1x8x1xf32>
    %50 = arith.truncf %47 : vector<1x8x8xf32> to vector<1x8x8xbf16>
    "tpu.trace_start"() <{level = 10 : i32, message = "bqk,bkd->bqd"}> : () -> ()
    %cst_18 = arith.constant dense<0.000000e+00> : vector<1x8x8xf32>
    %51 = tpu.matmul %50, %36, %cst_18 {dimension_numbers = #tpu.dot_dimension_numbers<[2], [1], [1], [2], [0, 0, 0, 1, 1, 2], [0], [0]>} : vector<1x8x8xbf16>, vector<1x8x8xbf16>, vector<1x8x8xf32> -> vector<1x8x8xf32>
    "tpu.trace_stop"() : () -> ()
    %52 = tpu.reciprocal %49 {approx = true} : vector<1x8x1xf32> -> vector<1x8x1xf32>
    %53 = vector.broadcast %52 : vector<1x8x1xf32> to vector<1x8x8xf32>
    %54 = arith.mulf %51, %53 : vector<1x8x8xf32>
    %55 = vector.shape_cast %54 : vector<1x8x8xf32> to vector<8x8xf32>
    %56 = arith.truncf %55 : vector<8x8xf32> to vector<8x8xbf16>
    %c0_19 = arith.constant 0 : index
    %c0_20 = arith.constant 0 : index
    %57 = vector.load %arg14[%c0_19, %c0_20] : memref<8x16xbf16, #tpu.memory_space<vmem>>, vector<8x8xbf16>
    tpu.vector_store %arg14[%c0_19, %c0_20], %56 {strides = array<i32>} : memref<8x16xbf16, #tpu.memory_space<vmem>>, vector<8x8xbf16>,
    %58 = vector.extract_strided_slice %33 {offsets = [0, 0, 8], sizes = [1, 8, 8], strides = [1, 1, 1]} : vector<1x8x48xbf16> to vector<1x8x8xbf16>
    %59 = vector.extract_strided_slice %33 {offsets = [0, 0, 24], sizes = [1, 8, 8], strides = [1, 1, 1]} : vector<1x8x48xbf16> to vector<1x8x8xbf16>
    %60 = vector.extract_strided_slice %33 {offsets = [0, 0, 40], sizes = [1, 8, 8], strides = [1, 1, 1]} : vector<1x8x48xbf16> to vector<1x8x8xbf16>
    "tpu.trace_start"() <{level = 10 : i32, message = "bqd,bkd->bqk"}> : () -> ()
    %cst_21 = arith.constant dense<0.000000e+00> : vector<1x8x8xf32>
    %61 = tpu.matmul %58, %59, %cst_21 {dimension_numbers = #tpu.dot_dimension_numbers<[2], [2], [1], [1], [0, 0, 0, 1, 1, 1], [0], [0]>} : vector<1x8x8xbf16>, vector<1x8x8xbf16>, vector<1x8x8xf32> -> vector<1x8x8xf32>
    "tpu.trace_stop"() : () -> ()
    %62 = tpu.iota {dimensions = array<i32: 2>} : vector<1x8x8xi32>
    %c3_i32_22 = arith.constant 3 : i32
    %63 = vector.broadcast %c3_i32_22 : i32 to vector<1x8x8xi32>
    %64 = arith.cmpi slt, %62, %63 : vector<1x8x8xi32>
    %cst_23 = arith.constant -1.000000e+30 : f32
    %65 = vector.broadcast %cst_23 : f32 to vector<1x8x8xf32>
    %66 = arith.select %64, %61, %65 : vector<1x8x8xi1>, vector<1x8x8xf32>
    %cst_24 = arith.constant dense<0xFF800000> : vector<1x8xf32>
    %67 = vector.multi_reduction <maximumf>, %66, %cst_24 [2] : vector<1x8x8xf32> to vector<1x8xf32>
    %68 = vector.shape_cast %67 : vector<1x8xf32> to vector<1x8x1xf32>
    %69 = vector.broadcast %68 : vector<1x8x1xf32> to vector<1x8x8xf32>
    %70 = arith.subf %66, %69 : vector<1x8x8xf32>
    %71 = math.exp %70 : vector<1x8x8xf32>
    %cst_25 = arith.constant dense<0.000000e+00> : vector<1x8xf32>
    %72 = vector.multi_reduction <add>, %71, %cst_25 [2] : vector<1x8x8xf32> to vector<1x8xf32>
    %73 = vector.shape_cast %72 : vector<1x8xf32> to vector<1x8x1xf32>
    %74 = arith.truncf %71 : vector<1x8x8xf32> to vector<1x8x8xbf16>
    "tpu.trace_start"() <{level = 10 : i32, message = "bqk,bkd->bqd"}> : () -> ()
    %cst_26 = arith.constant dense<0.000000e+00> : vector<1x8x8xf32>
    %75 = tpu.matmul %74, %60, %cst_26 {dimension_numbers = #tpu.dot_dimension_numbers<[2], [1], [1], [2], [0, 0, 0, 1, 1, 2], [0], [0]>} : vector<1x8x8xbf16>, vector<1x8x8xbf16>, vector<1x8x8xf32> -> vector<1x8x8xf32>
    "tpu.trace_stop"() : () -> ()
    %76 = tpu.reciprocal %73 {approx = true} : vector<1x8x1xf32> -> vector<1x8x1xf32>
    %77 = vector.broadcast %76 : vector<1x8x1xf32> to vector<1x8x8xf32>
    %78 = arith.mulf %75, %77 : vector<1x8x8xf32>
    %79 = vector.shape_cast %78 : vector<1x8x8xf32> to vector<8x8xf32>
    %80 = arith.truncf %79 : vector<8x8xf32> to vector<8x8xbf16>
    %c0_27 = arith.constant 0 : index
    %c8 = arith.constant 8 : index
    %81 = vector.load %arg14[%c0_27, %c8] : memref<8x16xbf16, #tpu.memory_space<vmem>>, vector<8x8xbf16>
    tpu.vector_store %arg14[%c0_27, %c8], %80 {strides = array<i32>} : memref<8x16xbf16, #tpu.memory_space<vmem>>, vector<8x8xbf16>,
    %c0_28 = arith.constant 0 : index
    %c0_29 = arith.constant 0 : index
    %82 = vector.load %arg14[%c0_28, %c0_29] : memref<8x16xbf16, #tpu.memory_space<vmem>>, vector<8x16xbf16>
    %c0_30 = arith.constant 0 : index
    %c0_31 = arith.constant 0 : index
    %83 = vector.load %arg5[%c0_30, %c0_31] : memref<16x128xbf16, #tpu.memory_space<vmem>>, vector<16x128xbf16>
    %cst_32 = arith.constant dense<0.000000e+00> : vector<8x128xf32>
    %84 = tpu.matmul %82, %83, %cst_32 {dimension_numbers = #tpu.dot_dimension_numbers<[1], [0], [0], [1], [0, 0, 1, 1], [], []>} : vector<8x16xbf16>, vector<16x128xbf16>, vector<8x128xf32> -> vector<8x128xf32>
    %85 = arith.addf %2, %84 : vector<8x128xf32>
    %c0_33 = arith.constant 0 : index
    %c0_34 = arith.constant 0 : index
    %86 = vector.load %arg6[%c0_33, %c0_34] : memref<1x128xf32, #tpu.memory_space<vmem>>, vector<1x128xf32>
    %87 = vector.broadcast %86 : vector<1x128xf32> to vector<8x128xf32>
    %88 = arith.addf %85, %87 : vector<8x128xf32>
    %c0_35 = arith.constant 0 : index
    %c0_36 = arith.constant 0 : index
    %89 = vector.load %arg7[%c0_35, %c0_36] : memref<1x128xf32, #tpu.memory_space<vmem>>, vector<1x128xf32>
    %c0_37 = arith.constant 0 : index
    %c0_38 = arith.constant 0 : index
    %90 = vector.load %arg8[%c0_37, %c0_38] : memref<1x128xf32, #tpu.memory_space<vmem>>, vector<1x128xf32>
    %cst_39 = arith.constant dense<0.000000e+00> : vector<8xf32>
    %91 = vector.multi_reduction <add>, %88, %cst_39 [1] : vector<8x128xf32> to vector<8xf32>
    %92 = vector.shape_cast %91 : vector<8xf32> to vector<8x1xf32>
    %cst_40 = arith.constant 3.125000e-02 : f32
    %93 = vector.broadcast %cst_40 : f32 to vector<8x1xf32>
    %94 = arith.mulf %92, %93 : vector<8x1xf32>
    %95 = arith.mulf %88, %88 : vector<8x128xf32>
    %cst_41 = arith.constant dense<0.000000e+00> : vector<8xf32>
    %96 = vector.multi_reduction <add>, %95, %cst_41 [1] : vector<8x128xf32> to vector<8xf32>
    %97 = vector.shape_cast %96 : vector<8xf32> to vector<8x1xf32>
    %cst_42 = arith.constant 3.125000e-02 : f32
    %98 = vector.broadcast %cst_42 : f32 to vector<8x1xf32>
    %99 = arith.mulf %97, %98 : vector<8x1xf32>
    %100 = arith.mulf %94, %94 : vector<8x1xf32>
    %101 = arith.subf %99, %100 : vector<8x1xf32>
    %cst_43 = arith.constant 0.000000e+00 : f32
    %102 = vector.broadcast %cst_43 : f32 to vector<8x1xf32>
    %103 = arith.maximumf %101, %102 : vector<8x1xf32>
    %104 = vector.broadcast %94 : vector<8x1xf32> to vector<8x128xf32>
    %105 = arith.subf %88, %104 : vector<8x128xf32>
    %cst_44 = arith.constant 9.99999974E-6 : f32
    %106 = vector.broadcast %cst_44 : f32 to vector<8x1xf32>
    %107 = arith.addf %103, %106 : vector<8x1xf32>
    %108 = math.rsqrt %107 : vector<8x1xf32>
    %109 = vector.broadcast %108 : vector<8x1xf32> to vector<8x128xf32>
    %110 = arith.mulf %105, %109 : vector<8x128xf32>
    %111 = vector.broadcast %89 : vector<1x128xf32> to vector<8x128xf32>
    %112 = arith.mulf %110, %111 : vector<8x128xf32>
    %113 = vector.broadcast %90 : vector<1x128xf32> to vector<8x128xf32>
    %114 = arith.addf %112, %113 : vector<8x128xf32>
    %c0_45 = arith.constant 0 : index
    %c0_46 = arith.constant 0 : index
    %115 = vector.load %arg9[%c0_45, %c0_46] : memref<128x128xbf16, #tpu.memory_space<vmem>>, vector<128x128xbf16>
    %116 = arith.truncf %114 : vector<8x128xf32> to vector<8x128xbf16>
    %cst_47 = arith.constant dense<0.000000e+00> : vector<8x128xf32>
    %117 = tpu.matmul %116, %115, %cst_47 {dimension_numbers = #tpu.dot_dimension_numbers<[1], [0], [0], [1], [0, 0, 1, 1], [], []>} : vector<8x128xbf16>, vector<128x128xbf16>, vector<8x128xf32> -> vector<8x128xf32>
    %c0_48 = arith.constant 0 : index
    %c0_49 = arith.constant 0 : index
    %118 = vector.load %arg10[%c0_48, %c0_49] : memref<1x128xf32, #tpu.memory_space<vmem>>, vector<1x128xf32>
    %119 = vector.broadcast %118 : vector<1x128xf32> to vector<8x128xf32>
    %120 = arith.addf %117, %119 : vector<8x128xf32>
    %cst_50 = arith.constant 5.000000e-01 : f32
    %121 = vector.broadcast %cst_50 : f32 to vector<8x128xf32>
    %122 = arith.mulf %121, %120 : vector<8x128xf32>
    %cst_51 = arith.constant 4.471500e-02 : f32
    %123 = vector.broadcast %cst_51 : f32 to vector<8x128xf32>
    %124 = arith.mulf %123, %120 : vector<8x128xf32>
    %125 = arith.mulf %124, %120 : vector<8x128xf32>
    %126 = arith.mulf %125, %120 : vector<8x128xf32>
    %127 = arith.addf %120, %126 : vector<8x128xf32>
    %cst_52 = arith.constant 0.797884583 : f32
    %128 = vector.broadcast %cst_52 : f32 to vector<8x128xf32>
    %129 = arith.mulf %128, %127 : vector<8x128xf32>
    %130 = math.tanh %129 : vector<8x128xf32>
    %cst_53 = arith.constant 1.000000e+00 : f32
    %131 = vector.broadcast %cst_53 : f32 to vector<8x128xf32>
    %132 = arith.addf %131, %130 : vector<8x128xf32>
    %133 = arith.mulf %122, %132 : vector<8x128xf32>
    %c0_54 = arith.constant 0 : index
    %c0_55 = arith.constant 0 : index
    %134 = vector.load %arg11[%c0_54, %c0_55] : memref<128x128xbf16, #tpu.memory_space<vmem>>, vector<128x128xbf16>
    %135 = arith.truncf %133 : vector<8x128xf32> to vector<8x128xbf16>
    %cst_56 = arith.constant dense<0.000000e+00> : vector<8x128xf32>
    %136 = tpu.matmul %135, %134, %cst_56 {dimension_numbers = #tpu.dot_dimension_numbers<[1], [0], [0], [1], [0, 0, 1, 1], [], []>} : vector<8x128xbf16>, vector<128x128xbf16>, vector<8x128xf32> -> vector<8x128xf32>
    %137 = arith.addf %88, %136 : vector<8x128xf32>
    %c0_57 = arith.constant 0 : index
    %c0_58 = arith.constant 0 : index
    %138 = vector.load %arg12[%c0_57, %c0_58] : memref<1x128xf32, #tpu.memory_space<vmem>>, vector<1x128xf32>
    %139 = vector.broadcast %138 : vector<1x128xf32> to vector<8x128xf32>
    %140 = arith.addf %137, %139 : vector<8x128xf32>
    %141 = vector.shape_cast %140 : vector<8x128xf32> to vector<1x8x128xf32>
    %142 = arith.truncf %141 : vector<1x8x128xf32> to vector<1x8x128xbf16>
    %c0_59 = arith.constant 0 : index
    %c0_60 = arith.constant 0 : index
    %c0_61 = arith.constant 0 : index
    %143 = vector.load %arg13[%c0_59, %c0_60, %c0_61] : memref<1x8x128xbf16, #tpu.memory_space<vmem>>, vector<1x8x128xbf16>
    tpu.vector_store %arg13[%c0_59, %c0_60, %c0_61], %142 {strides = array<i32>} : memref<1x8x128xbf16, #tpu.memory_space<vmem>>, vector<1x8x128xbf16>,
    return
  }
  func.func @transform_0(%arg0: i32) -> (i32, i32, i32) {
    %c0_i32 = arith.constant 0 : i32
    %c0_i32_0 = arith.constant 0 : i32
    %c0_i32_1 = arith.constant 0 : i32
    return %arg0, %c0_i32, %c0_i32_0 : i32, i32, i32
  }
  func.func @transform_1(%arg0: i32) -> (i32, i32) {
    %c0_i32 = arith.constant 0 : i32
    %c0_i32_0 = arith.constant 0 : i32
    %c0_i32_1 = arith.constant 0 : i32
    return %c0_i32, %c0_i32_0 : i32, i32
  }
  func.func @transform_2(%arg0: i32) -> (i32, i32) {
    %c0_i32 = arith.constant 0 : i32
    %c0_i32_0 = arith.constant 0 : i32
    %c0_i32_1 = arith.constant 0 : i32
    return %c0_i32, %c0_i32_0 : i32, i32
  }
  func.func @transform_3(%arg0: i32) -> (i32, i32) {
    %c0_i32 = arith.constant 0 : i32
    %c0_i32_0 = arith.constant 0 : i32
    %c0_i32_1 = arith.constant 0 : i32
    return %c0_i32, %c0_i32_0 : i32, i32
  }
  func.func @transform_4(%arg0: i32) -> (i32, i32) {
    %c0_i32 = arith.constant 0 : i32
    %c0_i32_0 = arith.constant 0 : i32
    %c0_i32_1 = arith.constant 0 : i32
    return %c0_i32, %c0_i32_0 : i32, i32
  }
  func.func @transform_5(%arg0: i32) -> (i32, i32) {
    %c0_i32 = arith.constant 0 : i32
    %c0_i32_0 = arith.constant 0 : i32
    %c0_i32_1 = arith.constant 0 : i32
    return %c0_i32, %c0_i32_0 : i32, i32
  }
  func.func @transform_6(%arg0: i32) -> (i32, i32) {
    %c0_i32 = arith.constant 0 : i32
    %c0_i32_0 = arith.constant 0 : i32
    %c0_i32_1 = arith.constant 0 : i32
    return %c0_i32, %c0_i32_0 : i32, i32
  }
  func.func @transform_7(%arg0: i32) -> (i32, i32) {
    %c0_i32 = arith.constant 0 : i32
    %c0_i32_0 = arith.constant 0 : i32
    %c0_i32_1 = arith.constant 0 : i32
    return %c0_i32, %c0_i32_0 : i32, i32
  }
  func.func @transform_8(%arg0: i32) -> (i32, i32) {
    %c0_i32 = arith.constant 0 : i32
    %c0_i32_0 = arith.constant 0 : i32
    %c0_i32_1 = arith.constant 0 : i32
    return %c0_i32, %c0_i32_0 : i32, i32
  }
  func.func @transform_9(%arg0: i32) -> (i32, i32) {
    %c0_i32 = arith.constant 0 : i32
    %c0_i32_0 = arith.constant 0 : i32
    %c0_i32_1 = arith.constant 0 : i32
    return %c0_i32, %c0_i32_0 : i32, i32
  }
  func.func @transform_10(%arg0: i32) -> (i32, i32) {
    %c0_i32 = arith.constant 0 : i32
    %c0_i32_0 = arith.constant 0 : i32
    %c0_i32_1 = arith.constant 0 : i32
    return %c0_i32, %c0_i32_0 : i32, i32
  }
  func.func @transform_11(%arg0: i32) -> (i32, i32) {
    %c0_i32 = arith.constant 0 : i32
    %c0_i32_0 = arith.constant 0 : i32
    %c0_i32_1 = arith.constant 0 : i32
    return %c0_i32, %c0_i32_0 : i32, i32
  }
  func.func @transform_12(%arg0: i32) -> (i32, i32, i32) {
    %c0_i32 = arith.constant 0 : i32
    %c0_i32_0 = arith.constant 0 : i32
    %c0_i32_1 = arith.constant 0 : i32
    return %arg0, %c0_i32, %c0_i32_0 : i32, i32, i32
  }
}

</mosaic_0001>

<bundles_post_ra>
// kernel: tpu_custom_call.1
= control target key start
LH: loop header
LB: loop body
LE: loop exit
PB: predicated region body
PF: predicated region fallthrough
CT: control target
= control target key end

     0   :  { %7 = vsyncpa [#allocation3], 0  ;;  %s633_s0 = inlined_call_operand.hbm [shape: f32[16,128], index: 0, kind: input, shape index: {}]   ;;  %s634_s1 = inlined_call_operand.hbm [shape: f32[8,128], index: 1, kind: input, shape index: {}]   ;;  %s635_s2 = inlined_call_operand.hbm [shape: f32[16,128], index: 2, kind: output, shape index: {}]  }
   0x1   :  { %9 = vsyncpa [#allocation3 + $0x1], 0 }
   0x2   :  { %10 = vsyncpa [#allocation6], 0 }
   0x3   :  { %11 = vsyncpa [#allocation4], 0 }
   0x4   :  { %13 = vsyncpa [#allocation4 + $0x1], 0  ;;  %s495_s9 = smov 0   ;;  %s497_s10 = smov 0  }
   0x5   :  { %s499_s11 = smov 0   ;;  %s501_s12 = smov 0  }
   0x6 LB: > { %s516_s13 = sadd.s32 4294967295, %s477_s12   ;;  %s276_s14 = sadd.s32 4294967294, %s477_s12   ;;  %s477_s12 = sphi %s501_s12, %s645_s12   ;;  %s473_s11 = sphi %s499_s11, %s644_s11   ;;  %s469_s10 = sphi %s497_s10, %s643_s10   ;;  %s465_s9 = sphi %s495_s9, %s642_s9  }
   0x7   : > { %p39_p0 = scmp.ne.s32.totalorder %s469_s10, %s465_s9  ;;  %p40_p1 = scmp.eq.s32.totalorder %s516_s13, 0 }
   0x8   : > { %p84_p2 = scmp.eq.s32.totalorder %s516_s13, 1  ;;  %p90_p3 = scmp.eq.s32.totalorder %s276_s14, 1 }
   0x9   : > { %p525_p4 = por %p40_p1, %p39_p0  ;;  %p277_p5 = scmp.ge.s32.totalorder %s477_s12, 1 }
   0xa   : > { %p530_p6 = por %p90_p3, %p39_p0  ;;  %p97_p7 = scmp.lt.s32.totalorder %s477_s12, 3 }
   0xb   : > { %s109_s19 = sshll.u32 %s634_s1, 4  ;;  %s479_s21 = smov [#allocation5]   ;;  %s110_s19 = int_to_ptr.hbm [resolvable:$true] %s109_s19 }
   0xc   : > { %p538_p8 = pnand %p277_p5, %p97_p7  ;;  %s111_s22 = sshll.u32 %s479_s21, 4  ;;  %s112_s22 = int_to_ptr.vmem [resolvable:$true] %s111_s22 }
   0xd   : > { %s548_s23 = sadd.s32 1, %s477_s12   ;;  %s26_s24 = sadd.s32 1, %s473_s11 }
   0xe   : > { %p298_p10 = pneg %p538_p8  ;;  %s23_s25 = ssub.s32 %s477_s12, %s548_s23 }
   0xf   : > { %p24_p12 = scmp.eq.s32.totalorder %s23_s25, 0  ;;  %p33_p13 = scmp.ne.s32.totalorder %s473_s11, %s469_s10 }
  0x10   : > { %p299_p11 = pnand %p298_p10, %p40_p1  ;;  %p34_p0 = scmp.eq.s32.totalorder %s477_s12, 0 }
  0x11   : > { %s557_s26 = scalar_select %p24_p12, %s473_s11, %s26_s24  }
  0x12   : > { %301 = dma.hbm_to_vmem [thread:$0]  (!%p299_p11), %s110_s19, 128, %s112_s22, [#allocation6]  }
  0x13   : > { %p561_p3 = por %p84_p2, %p33_p13  ;;  %p311_p5 = scmp.lt.s32.totalorder %s477_s12, 2 }
  0x14   : > { %s122_s28 = sand.u32 1, %s473_s11   ;;  %s281_s29 = sshll.u32 %s477_s12, 3 }
  0x15   : > { %p35_p7 = por %p34_p0, %p33_p13  ;;  %s280_s30 = sshll.u32 %s122_s28, 3 }
  0x16   : > { %s130_s5 = scalar_lea.hbm %s633_s0, %s281_s29  ;;  %s126_s7 = scalar_lea.vmem [#allocation2], %s280_s30 }
  0x17   : > { %s132_s6 = sshll.u32 %s130_s5, 4  ;;  %s134_s8 = sshll.u32 %s126_s7, 4  ;;  %s133_s6 = int_to_ptr.hbm [resolvable:$true] %s132_s6  ;;  %s135_s8 = int_to_ptr.vmem [resolvable:$true] %s134_s8 }
  0x18   : > { %p571_p10 = pnand %p311_p5, %p35_p7  ;;  %s123_s17 = scalar_lea.sflag [#allocation3], %s122_s28 }
  0x19   : > { %s377_s18 = sshra.s32 %s133_s6, 4  ;;  %s384_s24 = scalar_lea.hbm %s633_s0, 16  ;;  %s378_s18 = int_to_ptr.hbm [resolvable:$true] %s377_s18 }
  0x1a   : > { %s379_s19 = scalar_lea.hbm %s378_s18, 8  ;;  %p381_p11 = pneg %p571_p10 }
  0x1b   : > { %p380_p2 = scmp.ne.s32.totalorder %s378_s18, %s379_s19  ;;  %p385_p0 = scmp.lt.s32.totalorder %s378_s18, %s633_s0 }
  0x1c   : > { %p386_p5 = scmp.lt.s32.totalorder %s384_s24, %s379_s19 }
  0x1d   : > { %p382_p12 = pnand %p381_p11, %p380_p2 }
  0x1e   : > { %p387_p7 = por %p386_p5, %p385_p0 }
  0x1f   : > { %p383_p13 = pneg %p382_p12 }
  0x21   : > { %p388_p9 = pnand %p387_p7, %p383_p13 }
  0x23   : > { %391 = shalt.err (!%p388_p9)
}
  0x24   : > { %305 = dma.hbm_to_vmem [thread:$0]  (!%p571_p10), %s133_s6, 128, %s135_s8, %s123_s17  }
  0x25   : > { %143 = sbr.rel (%p538_p8) target bundleno = 60 (0x3c), region = 28  ;;  %s588_s28 = sand.u32 (!%p538_p8), 1, %s469_s10  }
  0x26   : > { %s283_s30 = sshll.u32 (!%p538_p8), %s588_s28, 3  ;;  %s146_s3 = scalar_lea.sflag (!%p538_p8), [#allocation3], %s588_s28 }
  0x27   : > { %s149_s4 = scalar_lea.vmem (!%p538_p8), [#allocation2], %s283_s30 }
  0x2a   : > { %452 = dma.done.wait (%p525_p4), %s146_s3, 128  }
  0x2b   : > { %454 = vsyncadd (%p525_p4), %s146_s3, 4294967168 }
  0x2c   : > { %456 = dma.done.wait (%p40_p1), [#allocation6], 128  }
  0x2d   : > { %458 = vsyncadd (%p40_p1), [#allocation6], 4294967168  ;;  %s287_s20 = sshll.u32 %s516_s13, 3  ;;  %s175_s8 = scalar_lea.vmem [#allocation7], %s283_s30  ;;  %v176_v0 = vld [vmem:[%s149_s4] sm:$0xff]  ;;  %v177_v1 = vld [vmem:[#allocation5] sm:$0xff] }
  0x2e   : > { %s191_s7 = scalar_lea.hbm %s635_s2, %s287_s20  ;;  %s193_s14 = sshll.u32 %s175_s8, 4  ;;  %v178_v2 = vadd.f32 %v177_v1, %v176_v0  ;;  %s194_s14 = int_to_ptr.vmem [resolvable:$true] %s193_s14 }
  0x2f   : > { %s195_s17 = sshll.u32 %s191_s7, 4  ;;  %s181_s15 = scalar_lea.sflag [#allocation4], %s588_s28  ;;  %s196_s17 = int_to_ptr.hbm [resolvable:$true] %s195_s17 }
  0x30   : > { %179 = vst [vmem:[%s175_s8] sm:$0xff] %v178_v2  ;;  %s421_s18 = sshra.s32 %s196_s17, 4  ;;  %s427_s22 = scalar_lea.hbm %s635_s2, 16  ;;  %s422_s18 = int_to_ptr.hbm [resolvable:$true] %s421_s18 }
  0x31   : > { %s423_s19 = scalar_lea.hbm %s422_s18, 8  ;;  %p428_p9 = scmp.lt.s32.totalorder %s422_s18, %s635_s2 }
  0x32   : > { %p424_p1 = scmp.ne.s32.totalorder %s422_s18, %s423_s19  ;;  %p429_p10 = scmp.lt.s32.totalorder %s427_s22, %s423_s19 }
  0x34   : > { %p425_p4 = pnand %p424_p1, %p561_p3  ;;  %p430_p2 = por %p429_p10, %p428_p9 }
  0x36   : > { %p426_p8 = pneg %p425_p4 }
  0x38   : > { %p431_p11 = pnand %p430_p2, %p426_p8 }
  0x3a   : > { %434 = shalt.err (!%p431_p11)
}
  0x3b   : > { %296 = dma.vmem_to_hbm [thread:$0]  (%p561_p3), %s194_s14, 128, %s196_s17, %s181_s15  }
  0x3c PF: > { %s207_s29 = sand.u32 1, %s465_s9   ;;  %p641_p12 = scmp.ge.s32.totalorder %s477_s12, 2 }
  0x3d   : > { %s208_s28 = scalar_lea.sflag [#allocation4], %s207_s29 }
  0x3e   : > { %p307_p13 = pnand %p641_p12, %p530_p6 }
  0x40   : > { %p308_p0 = pneg %p307_p13 }
  0x42   : > { %460 = dma.done.wait (%p308_p0), %s208_s28, 128  }
  0x43   : > { %462 = vsyncadd (%p308_p0), %s208_s28, 4294967168  ;;  %p16_p5 = scmp.ge.s32.totalorder %s548_s23, 4   ;;  %s642_s9 = smov %s469_s10 }
  0x44   : > { %s643_s10 = smov %s473_s11  ;;  %s644_s11 = smov %s557_s26 }
  0x45   : > { %s645_s12 = smov %s548_s23  ;;  %18 = sbr.rel (!%p16_p5) target bundleno = 6 (0x6), region = 77 }
  0x4a   :  { %214 = vsyncpa [#allocation3], 1 }
  0x4b   :  { %216 = vsyncpa [#allocation3 + $0x1], 1 }
  0x4c   :  { %217 = vsyncpa [#allocation6], 1 }
  0x4d   :  { %218 = vsyncpa [#allocation4], 1 }
  0x4e   :  { %220 = vsyncpa [#allocation4 + $0x1], 1 }

// kernel: _lambda_.6
= control target key start
LH: loop header
LB: loop body
LE: loop exit
PB: predicated region body
PF: predicated region fallthrough
CT: control target
= control target key end

     0   :  { %s411_s0 = inlined_call_operand.vmem [shape: f32[16,128], index: 0, kind: input, shape index: {}]   ;;  %s412_s2 = inlined_call_operand.vmem [shape: f32[1,128], index: 2, kind: input, shape index: {}]   ;;  %s413_s3 = inlined_call_operand.vmem [shape: f32[1,128], index: 3, kind: input, shape index: {}]   ;;  %s414_s5 = inlined_call_operand.vmem [shape: f32[1,128], index: 5, kind: input, shape index: {}]   ;;  %s415_s4 = inlined_call_operand.vmem [shape: bf16[128,128], index: 4, kind: input, shape index: {}]   ;;  %s416_s6 = inlined_call_operand.vmem [shape: f32[1,128], index: 6, kind: input, shape index: {}]   ;;  %s417_s7 = inlined_call_operand.vmem [shape: f32[1,128], index: 7, kind: input, shape index: {}]   ;;  %s418_s1 = inlined_call_operand.vmem [shape: f32[16,128], index: 1, kind: input, shape index: {}]   ;;  %s419_s8 = inlined_call_operand.vmem [shape: bf16[16,128], index: 8, kind: output, shape index: {}]  }
   0x1   :  { %v348_v0 = vld [vmem:[%s411_s0] sm:$0xff]  ;;  %v356_v2 = vld [vmem:[%s411_s0 + $0x8] sm:$0xff]  ;;  %v281_v4 = vld [vmem:[%s415_s4 + $0x38] sm:$0xff] }
   0x2   :  { %33 = vadd.xlane.f32.xlu0 %v348_v0  ;;  %v39_v1 = vmul.f32 %v348_v0, %v348_v0  ;;  %v40_v3 = vmul.f32 %v356_v2, %v356_v2  ;;  %158 = vmatpush.bf16.msra.mxu0 %v281_v4  ;;  %v280_v5 = vld [vmem:[%s415_s4 + $0x30] sm:$0xff]  ;;  %v279_v6 = vld [vmem:[%s415_s4 + $0x28] sm:$0xff]  ;;  %v278_v7 = vld [vmem:[%s415_s4 + $0x20] sm:$0xff] }
   0x3   :  { %v277_v8 = vld [vmem:[%s415_s4 + $0x18] sm:$0xff]  ;;  %v276_v11 = vld [vmem:[%s415_s4 + $0x10] sm:$0xff]  ;;  %v275_v15 = vld [vmem:[%s415_s4 + $0x8] sm:$0xff] }
   0x4   :  { %41 = vadd.xlane.f32.xlu1 %v39_v1  ;;  %v274_v18 = vld [vmem:[%s415_s4] sm:$0xff] }
   0x5   :  { %v287_v42 = vld [vmem:[%s412_s2] ss:$0 sm:$0xff] }
   0x6   :  { %159 = vmatpush.bf16.msra.mxu0 %v280_v5  ;;  %v288_v48 = vld [vmem:[%s413_s3] ss:$0 sm:$0xff] }
   0x7   :  { %v289_v53 = vld [vmem:[%s414_s5] ss:$0 sm:$0xff] }
   0xa   :  { %35 = vadd.xlane.f32.xlu0 %v356_v2  ;;  %160 = vmatpush.bf16.msra.mxu0 %v279_v6 }
   0xc   :  { %43 = vadd.xlane.f32.xlu1 %v40_v3 }
   0xe   :  { %161 = vmatpush.bf16.msra.mxu0 %v278_v7 }
  0x12   :  { %162 = vmatpush.bf16.msra.mxu0 %v277_v8 }
  0x16   :  { %163 = vmatpush.bf16.msra.mxu0 %v276_v11 }
  0x1a   :  { %164 = vmatpush.bf16.msra.mxu0 %v275_v15 }
  0x1e   :  { %165 = vmatpush.bf16.msra.mxu0 %v274_v18 }
  0x75   :  { %v34_v9 = vpop.xlane.xlu0 %33 }
  0x76   :  { %v37_v10 = vmul.f32 0.010416667, %v34_v9 }
  0x77   :  { %v42_v12 = vpop.xlane.xlu1 %41 }
  0x78   :  { %v47_v13 = vmul.f32 %v37_v10, %v37_v10  ;;  %v45_v14 = vmul.f32 0.010416667, %v42_v12  ;;  %v53_v39 = vsub.f32 %v348_v0, %v37_v10 }
  0x7a   :  { %v49_v16 = vsub.f32 %v45_v14, %v47_v13 }
  0x7c   :  { %v51_v17 = vmax.f32 %v49_v16, 0.0 }
  0x7d   :  { %v36_v19 = vpop.xlane.xlu0 %35 }
  0x7e   :  { %v55_v20 = vadd.f32 1e-05, %v51_v17  ;;  %v38_v21 = vmul.f32 0.010416667, %v36_v19 }
  0x7f   :  { %v44_v22 = vpop.xlane.xlu1 %43 }
  0x80   :  { %292 = vrsqrt.f32 %v55_v20  ;;  %v48_v23 = vmul.f32 %v38_v21, %v38_v21  ;;  %v46_v24 = vmul.f32 0.010416667, %v44_v22  ;;  %vm63_vm1 = vweird.f32 %v55_v20 }
  0x81   :  { %v54_v44 = vsub.f32 %v356_v2, %v38_v21 }
  0x82   :  { %v50_v25 = vsub.f32 %v46_v24, %v48_v23  ;;  %v290_v24 = vld [vmem:[%s416_s6] ss:$0 sm:$0xff] }
  0x84   :  { %v52_v26 = vmax.f32 %v50_v25, 0.0 }
  0x86   :  { %v293_v27 = vpop.eup %292  ;;  %v56_v29 = vadd.f32 1e-05, %v52_v26 }
  0x87   :  { %v58_v28 = vmul.f32 %v293_v27, %v55_v20  ;;  %vm64_vm0 = vweird.f32 %v293_v27 }
  0x88   :  { %294 = vrsqrt.f32 %v56_v29  ;;  %vm65_vm2 = vmor %vm63_vm1, %vm64_vm0  ;;  %vm73_vm4 = vweird.f32 %v56_v29 }
  0x89   :  { %v59_v30 = vmul.f32 %v293_v27, %v58_v28  ;;  %v291_v28 = vld [vmem:[%s417_s7] ss:$0 sm:$0xff] }
  0x8b   :  { %v60_v31 = vmul.f32 0.5, %v59_v30 }
  0x8d   :  { %v61_v32 = vsub.f32 1.5, %v60_v31 }
  0x8e   :  { %v295_v33 = vpop.eup %294 }
  0x8f   :  { %v68_v34 = vmul.f32 %v295_v33, %v56_v29  ;;  %v62_v35 = vmul.f32 %v293_v27, %v61_v32  ;;  %vm74_vm3 = vweird.f32 %v295_v33 }
  0x90   :  { %vm75_vm5 = vmor %vm73_vm4, %vm74_vm3 }
  0x91   :  { %v69_v36 = vmul.f32 %v295_v33, %v68_v34  ;;  %v66_v38 = vsel %vm65_vm2, %v293_v27, %v62_v35  ;;  %v230_v35 = vld [vmem:[%s418_s1] sm:$0xff] }
  0x92   :  { %v77_v41 = vmul.f32 %v66_v38, %v53_v39 }
  0x93   :  { %v70_v37 = vmul.f32 0.5, %v69_v36  ;;  %v231_v36 = vld [vmem:[%s418_s1 + $0x8] sm:$0xff] }
  0x94   :  { %v82_v47 = vmul.f32 %v287_v42, %v77_v41 }
  0x95   :  { %v71_v40 = vsub.f32 1.5, %v70_v37 }
  0x96   :  { %v87_v50 = vadd.f32 %v288_v48, %v82_v47 }
  0x97   :  { %v72_v43 = vmul.f32 %v295_v33, %v71_v40 }
  0x99   :  { %v76_v45 = vsel %vm75_vm5, %v295_v33, %v72_v43 }
  0x9a   :  { %v78_v46 = vmul.f32 %v76_v45, %v54_v44 }
  0x9c   :  { %v83_v49 = vmul.f32 %v287_v42, %v78_v46 }
  0x9e   :  { %v88_v51 = vadd.f32 %v288_v48, %v83_v49 }
  0xa0   :  { %v105_v52 = vpack.c.bf16 %v88_v51, %v87_v50 }
  0xa2   :  { %166 = vmatmul.bf16.vlgmr.msra.gmra.mxu0 %v105_v52 }
 0x11f   :  { %v167_v54 = vpop.f32.mrf.mxu0 }
 0x120   :  { %v168_v55 = vadd.f32 %v289_v53, %v167_v54 }
 0x122   :  { %174 = vadd.xlane.f32.xlu2 %v168_v55  ;;  %v180_v56 = vmul.f32 %v168_v55, %v168_v55 }
 0x124   :  { %182 = vadd.xlane.f32.xlu0 %v180_v56 }
 0x127   :  { %v169_v57 = vpop.f32.mrf.mxu0 }
 0x128   :  { %v170_v58 = vadd.f32 %v289_v53, %v169_v57 }
 0x12a   :  { %176 = vadd.xlane.f32.xlu2 %v170_v58  ;;  %v181_v59 = vmul.f32 %v170_v58, %v170_v58 }
 0x12c   :  { %184 = vadd.xlane.f32.xlu1 %v181_v59 }
 0x195   :  { %v175_v60 = vpop.xlane.xlu2 %174 }
 0x196   :  { %v178_v61 = vmul.f32 0.03125, %v175_v60 }
 0x197   :  { %v183_v62 = vpop.xlane.xlu0 %182 }
 0x198   :  { %v188_v63 = vmul.f32 %v178_v61, %v178_v61  ;;  %v186_v0 = vmul.f32 0.03125, %v183_v62  ;;  %v194_v22 = vsub.f32 %v168_v55, %v178_v61 }
 0x19a   :  { %v190_v1 = vsub.f32 %v186_v0, %v188_v63 }
 0x19c   :  { %v192_v2 = vmax.f32 %v190_v1, 0.0 }
 0x19d   :  { %v177_v3 = vpop.xlane.xlu2 %176 }
 0x19e   :  { %v196_v4 = vadd.f32 1e-05, %v192_v2  ;;  %v179_v5 = vmul.f32 0.03125, %v177_v3 }
 0x19f   :  { %v185_v6 = vpop.xlane.xlu1 %184 }
 0x1a0   :  { %296 = vrsqrt.f32 %v196_v4  ;;  %v189_v7 = vmul.f32 %v179_v5, %v179_v5  ;;  %v187_v8 = vmul.f32 0.03125, %v185_v6  ;;  %vm204_vm7 = vweird.f32 %v196_v4 }
 0x1a1   :  { %v195_v30 = vsub.f32 %v170_v58, %v179_v5 }
 0x1a2   :  { %v191_v9 = vsub.f32 %v187_v8, %v189_v7 }
 0x1a4   :  { %v193_v10 = vmax.f32 %v191_v9, 0.0 }
 0x1a6   :  { %v297_v11 = vpop.eup %296  ;;  %v197_v13 = vadd.f32 1e-05, %v193_v10 }
 0x1a7   :  { %v199_v12 = vmul.f32 %v297_v11, %v196_v4  ;;  %vm205_vm6 = vweird.f32 %v297_v11 }
 0x1a8   :  { %298 = vrsqrt.f32 %v197_v13  ;;  %vm206_vm8 = vmor %vm204_vm7, %vm205_vm6  ;;  %vm214_vm10 = vweird.f32 %v197_v13 }
 0x1a9   :  { %v200_v14 = vmul.f32 %v297_v11, %v199_v12 }
 0x1ab   :  { %v201_v15 = vmul.f32 0.5, %v200_v14 }
 0x1ad   :  { %v202_v16 = vsub.f32 1.5, %v201_v15 }
 0x1ae   :  { %v299_v17 = vpop.eup %298 }
 0x1af   :  { %v203_v18 = vmul.f32 %v297_v11, %v202_v16  ;;  %v209_v19 = vmul.f32 %v299_v17, %v197_v13  ;;  %vm215_vm9 = vweird.f32 %v299_v17 }
 0x1b0   :  { %vm216_vm11 = vmor %vm214_vm10, %vm215_vm9 }
 0x1b1   :  { %v207_v20 = vsel %vm206_vm8, %v297_v11, %v203_v18  ;;  %v210_v21 = vmul.f32 %v299_v17, %v209_v19 }
 0x1b2   :  { %v218_v25 = vmul.f32 %v207_v20, %v194_v22 }
 0x1b3   :  { %v211_v23 = vmul.f32 0.5, %v210_v21 }
 0x1b4   :  { %v223_v29 = vmul.f32 %v290_v24, %v218_v25 }
 0x1b5   :  { %v212_v26 = vsub.f32 1.5, %v211_v23 }
 0x1b6   :  { %v228_v33 = vadd.f32 %v291_v28, %v223_v29 }
 0x1b7   :  { %v213_v27 = vmul.f32 %v299_v17, %v212_v26 }
 0x1b8   :  { %v232_v38 = vadd.f32 %v230_v35, %v228_v33 }
 0x1b9   :  { %v217_v31 = vsel %vm216_vm11, %v299_v17, %v213_v27 }
 0x1ba   :  { %v219_v32 = vmul.f32 %v217_v31, %v195_v30 }
 0x1bc   :  { %v224_v34 = vmul.f32 %v290_v24, %v219_v32 }
 0x1be   :  { %v229_v37 = vadd.f32 %v291_v28, %v224_v34 }
 0x1c0   :  { %v233_v39 = vadd.f32 %v231_v36, %v229_v37 }
 0x1c2   :  { %v285_v40 = vpack.c.bf16 %v233_v39, %v232_v38 }
 0x1c4   :  { %286 = vst [vmem:[%s419_s8] sm:$0xff] %v285_v40  }

// kernel: _lambda_.7
= control target key start
LH: loop header
LB: loop body
LE: loop exit
PB: predicated region body
PF: predicated region fallthrough
CT: control target
= control target key end

     0   :  { %s1448_s21 = smov 0   ;;  %s1637_s0 = inlined_call_operand.vmem [shape: bf16[4,8,128], index: 0, kind: input, shape index: {}]   ;;  %s1638_s1 = inlined_call_operand.vmem [shape: f32[1,128], index: 1, kind: input, shape index: {}]   ;;  %s1639_s2 = inlined_call_operand.vmem [shape: f32[1,128], index: 2, kind: input, shape index: {}]   ;;  %s1640_s3 = inlined_call_operand.vmem [shape: bf16[128,48], index: 3, kind: input, shape index: {}]   ;;  %s1641_s4 = inlined_call_operand.vmem [shape: bf16[16,128], index: 4, kind: input, shape index: {}]   ;;  %s1642_s5 = inlined_call_operand.vmem [shape: f32[1,128], index: 5, kind: input, shape index: {}]   ;;  %s1643_s6 = inlined_call_operand.vmem [shape: f32[1,128], index: 6, kind: input, shape index: {}]   ;;  %s1644_s7 = inlined_call_operand.vmem [shape: f32[1,128], index: 7, kind: input, shape index: {}]   ;;  %s1645_s8 = inlined_call_operand.vmem [shape: bf16[128,128], index: 8, kind: input, shape index: {}]   ;;  %s1646_s9 = inlined_call_operand.vmem [shape: f32[1,128], index: 9, kind: input, shape index: {}]   ;;  %s1647_s10 = inlined_call_operand.vmem [shape: bf16[128,128], index: 10, kind: input, shape index: {}]   ;;  %s1648_s11 = inlined_call_operand.vmem [shape: f32[1,128], index: 11, kind: input, shape index: {}]   ;;  %s1649_s12 = inlined_call_operand.vmem [shape: bf16[4,8,128], index: 12, kind: output, shape index: {}]  }
   0x1 LB: > { %s1161_s22 = sadd.s32 4294967295, %s1375_s21   ;;  %p1165_p0 = scmp.ge.s32.totalorder %s1375_s21, 1  ;;  %s1375_s21 = sphi %s1448_s21, %s22_s21  }
   0x2   : > { %p363_p1 = scmp.lt.s32.totalorder %s1375_s21, 3 }
   0x4   : > { %p364_p2 = pnand %p1165_p0, %p363_p1 }
   0x5   : > { %s1166_s23 = sshll.u32 (!%p364_p2), %s1161_s22, 1  ;;  %s1377_s15 = smov (!%p364_p2), 96  }
   0x6   : > { %367 = sbr.rel (%p364_p2) target bundleno = 1813 (0x715), region = 68  ;;  %p406_p3 = scmp.lt.s32.totalorder (!%p364_p2), %s1166_s23, 3 }
   0x7   : > { %s1378_s16 = smov (!%p364_p2), 112   ;;  %s1379_s17 = smov (!%p364_p2), 104  }
   0x8   : > { %s1380_s18 = smov (!%p364_p2), 120   ;;  %s1381_s19 = smov (!%p364_p2), 88  }
   0x9   : > { %s1382_s20 = smov (!%p364_p2), 8  }
   0xb   : > { %s1651_s23 = smov (!%p406_p3, %s1166_s23), 3  ;;  %v1292_v5 = vld [vmem:[%s1640_s3 + $0x38] sm:$0xff]  ;;  %v1291_v6 = vld [vmem:[%s1640_s3 + $0x30] sm:$0xff]  ;;  %v1290_v7 = vld [vmem:[%s1640_s3 + $0x28] sm:$0xff]  ;;  %vm566_vm6 = vcmask 64512   ;;  %vm640_vm7 = vcmask 1043456  }
   0xc   : > { %s1167_s24 = sshll.u32 %s1651_s23, 2  ;;  %545 = vmatpush.bf16.msra.mxu0 %v1292_v5  ;;  %v1289_v8 = vld [vmem:[%s1640_s3 + $0x20] sm:$0xff]  ;;  %v1288_v9 = vld [vmem:[%s1640_s3 + $0x18] sm:$0xff]  ;;  %v1287_v12 = vld [vmem:[%s1640_s3 + $0x10] sm:$0xff]  ;;  %vm684_vm9 = vcmask 60416   ;;  %vm811_vm10 = vcmask 126016  }
   0xd   : > { %s409_s27 = scalar_lea.vmem %s1637_s0, %s1167_s24  ;;  %v1286_v16 = vld [vmem:[%s1640_s3 + $0x8] sm:$0xff]  ;;  %v1285_v19 = vld [vmem:[%s1640_s3] sm:$0xff]  ;;  %vm829_vm11 = vcmask 130048   ;;  %s415_s25 = scalar_lea.vmem %s1649_s12, %s1167_s24 }
   0xe   : > { %v1312_v0 = vld [vmem:[%s409_s27] sm:$0xff]  }
   0xf   : > { %v1464_v1 = vunpack.c.l.bf16 %v1312_v0  ;;  %v1469_v3 = vunpack.c.h.bf16 %v1312_v0  ;;  %v1334_v43 = vld [vmem:[%s1638_s1] ss:$0 sm:$0xff] }
  0x10   : > { %546 = vmatpush.bf16.msra.mxu0 %v1291_v6  ;;  %v1335_v49 = vld [vmem:[%s1639_s2] ss:$0 sm:$0xff] }
  0x11   : > { %424 = vadd.xlane.f32.xlu0 %v1464_v1  ;;  %v430_v2 = vmul.f32 %v1464_v1, %v1464_v1  ;;  %v431_v4 = vmul.f32 %v1469_v3, %v1469_v3 }
  0x13   : > { %432 = vadd.xlane.f32.xlu1 %v430_v2 }
  0x14   : > { %547 = vmatpush.bf16.msra.mxu0 %v1290_v7 }
  0x18   : > { %548 = vmatpush.bf16.msra.mxu0 %v1289_v8 }
  0x19   : > { %426 = vadd.xlane.f32.xlu0 %v1469_v3 }
  0x1b   : > { %434 = vadd.xlane.f32.xlu1 %v431_v4 }
  0x1c   : > { %549 = vmatpush.bf16.msra.mxu0 %v1288_v9 }
  0x20   : > { %550 = vmatpush.bf16.msra.mxu0 %v1287_v12 }
  0x24   : > { %551 = vmatpush.bf16.msra.mxu0 %v1286_v16 }
  0x28   : > { %552 = vmatpush.bf16.msra.mxu0 %v1285_v19 }
  0x84   : > { %v425_v10 = vpop.xlane.xlu0 %424 }
  0x85   : > { %v428_v11 = vmul.f32 0.03125, %v425_v10  ;;  %v610_v10 = vlaneseq }
  0x86   : > { %v433_v13 = vpop.xlane.xlu1 %432 }
  0x87   : > { %v438_v14 = vmul.f32 %v428_v11, %v428_v11  ;;  %v436_v15 = vmul.f32 0.03125, %v433_v13  ;;  %v444_v40 = vsub.f32 %v1464_v1, %v428_v11  ;;  %v611_v11 = vand.u32 127, %v610_v10 }
  0x89   : > { %v440_v17 = vsub.f32 %v436_v15, %v438_v14  ;;  %vm612_vm8 = vcmp.lt.s32.totalorder %v611_v11, 5 }
  0x8b   : > { %v442_v18 = vmax.f32 %v440_v17, 0.0 }
  0x8c   : > { %v427_v20 = vpop.xlane.xlu0 %426 }
  0x8d   : > { %v446_v21 = vadd.f32 1e-05, %v442_v18  ;;  %v429_v22 = vmul.f32 0.03125, %v427_v20 }
  0x8e   : > { %v435_v23 = vpop.xlane.xlu1 %434 }
  0x8f   : > { %1341 = vrsqrt.f32 %v446_v21  ;;  %v439_v24 = vmul.f32 %v429_v22, %v429_v22  ;;  %v437_v25 = vmul.f32 0.03125, %v435_v23  ;;  %vm454_vm1 = vweird.f32 %v446_v21 }
  0x90   : > { %v445_v45 = vsub.f32 %v1469_v3, %v429_v22 }
  0x91   : > { %v441_v26 = vsub.f32 %v437_v25, %v439_v24 }
  0x93   : > { %v443_v27 = vmax.f32 %v441_v26, 0.0 }
  0x95   : > { %v1342_v28 = vpop.eup %1341  ;;  %v447_v30 = vadd.f32 1e-05, %v443_v27 }
  0x96   : > { %v449_v29 = vmul.f32 %v1342_v28, %v446_v21  ;;  %vm455_vm0 = vweird.f32 %v1342_v28 }
  0x97   : > { %1343 = vrsqrt.f32 %v447_v30  ;;  %vm456_vm2 = vmor %vm454_vm1, %vm455_vm0  ;;  %vm464_vm4 = vweird.f32 %v447_v30 }
  0x98   : > { %v450_v31 = vmul.f32 %v1342_v28, %v449_v29 }
  0x9a   : > { %v451_v32 = vmul.f32 0.5, %v450_v31 }
  0x9c   : > { %v452_v33 = vsub.f32 1.5, %v451_v32 }
  0x9d   : > { %v1344_v34 = vpop.eup %1343 }
  0x9e   : > { %v459_v35 = vmul.f32 %v1344_v34, %v447_v30  ;;  %v453_v36 = vmul.f32 %v1342_v28, %v452_v33  ;;  %vm465_vm3 = vweird.f32 %v1344_v34 }
  0x9f   : > { %vm466_vm5 = vmor %vm464_vm4, %vm465_vm3 }
  0xa0   : > { %v460_v37 = vmul.f32 %v1344_v34, %v459_v35  ;;  %v457_v39 = vsel %vm456_vm2, %v1342_v28, %v453_v36 }
  0xa1   : > { %v468_v42 = vmul.f32 %v457_v39, %v444_v40 }
  0xa2   : > { %v461_v38 = vmul.f32 0.5, %v460_v37 }
  0xa3   : > { %v473_v48 = vmul.f32 %v1334_v43, %v468_v42 }
  0xa4   : > { %v462_v41 = vsub.f32 1.5, %v461_v38 }
  0xa5   : > { %v478_v51 = vadd.f32 %v1335_v49, %v473_v48 }
  0xa6   : > { %v463_v44 = vmul.f32 %v1344_v34, %v462_v41 }
  0xa8   : > { %v467_v46 = vsel %vm466_vm5, %v1344_v34, %v463_v44 }
  0xa9   : > { %v469_v47 = vmul.f32 %v467_v46, %v445_v45 }
  0xab   : > { %v474_v50 = vmul.f32 %v1334_v43, %v469_v47 }
  0xad   : > { %v479_v52 = vadd.f32 %v1335_v49, %v474_v50 }
  0xaf   : > { %v496_v53 = vpack.c.bf16 %v479_v52, %v478_v51 }
  0xb1   : > { %553 = vmatmul.bf16.vlgmr.msra.gmra.mxu0 %v496_v53 }
 0x12e   : > { %v554_v54 = vpop.f32.mrf.mxu0 }
 0x12f   : > { %v559_v55 = vpack.c.bf16 %v554_v54, %v554_v54 }
 0x131   : > { %v562_v56 = vunpack.c.l.b16 %v559_v55 }
 0x133   : > { %v563_v57 = vpack.c.b16 %v562_v56, %v562_v56 }
 0x135   : > { %635 = vrot.lane.b32.xlu1 %v563_v57, %s1377_s15  ;;  %564 = vrot.lane.b32.xlu2 %v563_v57, %s1378_s16 }
 0x136   : > { %v556_v58 = vpop.f32.mrf.mxu0 }
 0x137   : > { %v560_v59 = vpack.c.bf16 %v556_v58, %v556_v58 }
 0x139   : > { %v587_v60 = vunpack.c.l.b16 %v560_v59 }
 0x13b   : > { %v1506_v61 = vpack.c.b16 %v587_v60, %v587_v60 }
 0x13d   : > { %657 = vrot.lane.b32.xlu1 %v1506_v61, %s1377_s15  ;;  %589 = vrot.lane.b32.xlu2 %v1506_v61, %s1378_s16 }
 0x145   : > { %689 = vrot.lane.b32.xlu2 %v563_v57, %s1379_s17 }
 0x14d   : > { %687 = vrot.lane.b32.xlu2 %v563_v57, %s1380_s18 }
 0x155   : > { %710 = vrot.lane.b32.xlu2 %v1506_v61, %s1380_s18 }
 0x18f   : > { %v565_v62 = vpop.permute.xlu2 %564 }
 0x190   : > { %v571_v63 = vsel %vm566_vm6, %v565_v62, 0 }
 0x191   : > { %580 = vmatpush.bf16.xpose.msra.mxu1 %v571_v63 }
 0x197   : > { %v590_v0 = vpop.permute.xlu2 %589 }
 0x198   : > { %1202 = vmatmul.msk.bf16.vlgmr.msra.gmra.mxu1 %vm566_vm6, %v559_v55  ;;  %v595_v2 = vsel %vm566_vm6, %v590_v0, 0 }
 0x199   : > { %604 = vmatpush.bf16.xpose.msra.mxu2 %v595_v2 }
 0x19f   : > { %v690_v4 = vpop.permute.xlu2 %689 }
 0x1a0   : > { %1203 = vmatmul.msk.bf16.vlgmr.msra.gmra.mxu2 %vm566_vm6, %v560_v59  ;;  %v695_v7 = vsel %vm566_vm6, %v690_v4, 0 }
 0x1a7   : > { %v636_v5 = vpop.permute.xlu1 %635  ;;  %v688_v20 = vpop.permute.xlu2 %687 }
 0x1a8   : > { %v642_v6 = vsel %vm640_vm7, %v636_v5, 0 }
 0x1a9   : > { %651 = vmatpush.bf16.msrb.mxu1 %v642_v6 }
 0x1ad   : > { %704 = vmatpush.bf16.xpose.msra.mxu1 %v695_v7 }
 0x1af   : > { %v658_v8 = vpop.permute.xlu1 %657  ;;  %v711_v24 = vpop.permute.xlu2 %710 }
 0x1b0   : > { %v663_v9 = vsel %vm640_vm7, %v658_v8, 0 }
 0x1b1   : > { %672 = vmatpush.bf16.msra.mxu3 %v663_v9 }
 0x215   : > { %v582_v12 = vpop.f32.mrf.mxu1 }
 0x216   : > { %v613_v13 = vsel %vm612_vm8, %v582_v12, -1e+30 }
 0x217   : > { %v615_v14 = vsel %vm566_vm6, %v613_v13, -inf }
 0x218   : > { %616 = vmax.xlane.f32.xlu0 %v615_v14 }
 0x21d   : > { %v584_v15 = vpop.f32.mrf.mxu1 }
 0x223   : > { %v606_v16 = vpop.f32.mrf.mxu2 }
 0x224   : > { %v614_v17 = vsel %vm612_vm8, %v606_v16, -1e+30 }
 0x225   : > { %v618_v18 = vsel %vm566_vm6, %v614_v17, -inf }
 0x226   : > { %619 = vmax.xlane.f32.xlu2 %v618_v18 }
 0x22b   : > { %v608_v19 = vpop.f32.mrf.mxu2 }
 0x22c   : > { %712 = vrot.lane.b32.xlu0 %v1506_v61, %s1379_s17 }
 0x23e   : > { %755 = vrot.lane.b32.xlu2 %v563_v57, %s1381_s19 }
 0x28b   : > { %v617_v21 = vpop.xlane.xlu0 %616 }
 0x28c   : > { %v621_v22 = vsub.f32 %v613_v13, %v617_v21 }
 0x28e   : > { %v623_v23 = vmul.f32 1.442695, %v621_v22  ;;  %v1294_v22 = vld [vmem:[%s1641_s4] sm:$0xff] }
 0x290   : > { %1345 = vpow2.f32 %v623_v23 }
 0x296   : > { %v1346_v25 = vpop.eup %1345 }
 0x297   : > { %v627_v26 = vsel %vm566_vm6, %v1346_v25, 0.0  ;;  %v633_v27 = vpack.c.bf16 %v1346_v25, %v1346_v25 }
 0x298   : > { %628 = vadd.xlane.f32.xlu2 %v627_v26  ;;  %v1336_v26 = vld [vmem:[%s1642_s5] ss:$0 sm:$0xff] }
 0x299   : > { %1204 = vmatmul.msk.bf16.vlgmr.msrb.gmra.mxu1 %vm566_vm6, %v633_v27  ;;  %v620_v28 = vpop.xlane.xlu2 %619 }
 0x29a   : > { %v622_v29 = vsub.f32 %v614_v17, %v620_v28 }
 0x29c   : > { %v625_v30 = vmul.f32 1.442695, %v622_v29 }
 0x29e   : > { %1347 = vpow2.f32 %v625_v30  ;;  %v713_v31 = vpop.permute.xlu0 %712 }
 0x29f   : > { %v718_v32 = vsel %vm566_vm6, %v713_v31, 0 }
 0x2a0   : > { %727 = vmatpush.bf16.xpose.msrb.mxu2 %v718_v32 }
 0x2a1   : > { %v756_v33 = vpop.permute.xlu2 %755 }
 0x2a2   : > { %v761_v34 = vsel %vm640_vm7, %v756_v33, 0 }
 0x2a3   : > { %770 = vmatpush.bf16.msrb.mxu3 %v761_v34 }
 0x2a4   : > { %v1348_v35 = vpop.eup %1347 }
 0x2a5   : > { %v634_v36 = vpack.c.bf16 %v1348_v35, %v1348_v35  ;;  %v630_v53 = vsel %vm566_vm6, %v1348_v35, 0.0  ;;  %v1301_v35 = vld [vmem:[%s1645_s8 + $0x30] sm:$0xff] }
 0x2a7   : > { %1205 = vmatmul.msk.bf16.vlgmr.msra.gmra.mxu3 %vm566_vm6, %v634_v36  ;;  %1207 = vmatmul.msk.bf16.vlgmr.msrb.gmra.mxu2 %vm566_vm6, %v711_v24  ;;  %v1299_v36 = vld [vmem:[%s1645_s8 + $0x20] sm:$0xff] }
 0x2a8   : > { %840 = vmatpush.bf16.msra.mxu2 %v1294_v22  ;;  %v1308_v22 = vld [vmem:[%s1647_s10 + $0x28] sm:$0xff] }
 0x2a9   : > { %1206 = vmatmul.msk.bf16.vlgmr.msra.gmra.mxu1 %vm566_vm6, %v688_v20 }
 0x30b   : > { %v629_v37 = vpop.xlane.xlu2 %628 }
 0x30c   : > { %1349 = vrcp.f32 %v629_v37 }
 0x312   : > { %v1350_v38 = vpop.eup %1349 }
 0x316   : > { %v653_v39 = vpop.f32.mrf.mxu1 }
 0x317   : > { %v680_v40 = vmul.f32 %v1350_v38, %v653_v39 }
 0x319   : > { %v682_v41 = vpack.c.bf16 %v680_v40, %v680_v40  ;;  %v1298_v40 = vld [vmem:[%s1645_s8 + $0x18] sm:$0xff] }
 0x31b   : > { %685 = vst.msk [vmem:[#allocation2] sm:$0xf] %vm684_vm9, %v682_v41 }
 0x31e   : > { %v655_v42 = vpop.f32.mrf.mxu1 }
 0x326   : > { %v706_v43 = vpop.f32.mrf.mxu1 }
 0x327   : > { %v733_v44 = vsel %vm612_vm8, %v706_v43, -1e+30 }
 0x328   : > { %v735_v45 = vsel %vm566_vm6, %v733_v44, -inf }
 0x329   : > { %736 = vmax.xlane.f32.xlu0 %v735_v45 }
 0x32a   : > { %v674_v46 = vpop.f32.mrf.mxu3  ;;  %v729_v47 = vpop.f32.mrf.mxu2 }
 0x32b   : > { %v734_v48 = vsel %vm612_vm8, %v729_v47, -1e+30 }
 0x32c   : > { %v738_v49 = vsel %vm566_vm6, %v734_v48, -inf }
 0x32d   : > { %739 = vmax.xlane.f32.xlu1 %v738_v49  ;;  %v1295_v49 = vld [vmem:[%s1645_s8] sm:$0xff] }
 0x32e   : > { %v708_v50 = vpop.f32.mrf.mxu1 }
 0x332   : > { %v676_v51 = vpop.f32.mrf.mxu3  ;;  %v731_v52 = vpop.f32.mrf.mxu2 }
 0x33d   : > { %776 = vrot.lane.b32.xlu0 %v1506_v61, %s1381_s19 }
 0x367   : > { %631 = vadd.xlane.f32.xlu0 %v630_v53 }
 0x39c   : > { %v737_v54 = vpop.xlane.xlu0 %736 }
 0x39d   : > { %v741_v55 = vsub.f32 %v733_v44, %v737_v54  ;;  %v1297_v44 = vld [vmem:[%s1645_s8 + $0x10] sm:$0xff] }
 0x39f   : > { %v743_v56 = vmul.f32 1.442695, %v741_v55 }
 0x3a0   : > { %v740_v57 = vpop.xlane.xlu1 %739 }
 0x3a1   : > { %1351 = vpow2.f32 %v743_v56  ;;  %v742_v58 = vsub.f32 %v734_v48, %v740_v57  ;;  %v1296_v48 = vld [vmem:[%s1645_s8 + $0x8] sm:$0xff] }
 0x3a3   : > { %v745_v59 = vmul.f32 1.442695, %v742_v58 }
 0x3a5   : > { %1353 = vpow2.f32 %v745_v59 }
 0x3a7   : > { %v1352_v60 = vpop.eup %1351 }
 0x3a8   : > { %v747_v62 = vsel %vm566_vm6, %v1352_v60, 0.0  ;;  %v753_v63 = vpack.c.bf16 %v1352_v60, %v1352_v60 }
 0x3a9   : > { %748 = vadd.xlane.f32.xlu1 %v747_v62 }
 0x3aa   : > { %1208 = vmatmul.msk.bf16.vlgmr.msrb.gmra.mxu3 %vm566_vm6, %v753_v63 }
 0x3ab   : > { %v1354_v0 = vpop.eup %1353 }
 0x3ac   : > { %v750_v4 = vsel %vm566_vm6, %v1354_v0, 0.0  ;;  %v754_v5 = vpack.c.bf16 %v1354_v0, %v1354_v0 }
 0x3af   : > { %v777_v61 = vpop.permute.xlu0 %776 }
 0x3b0   : > { %v782_v2 = vsel %vm640_vm7, %v777_v61, 0 }
 0x3b1   : > { %791 = vmatpush.bf16.msrb.mxu1 %v782_v2  ;;  %751 = vadd.xlane.f32.xlu1 %v750_v4 }
 0x3b4   : > { %1209 = vmatmul.msk.bf16.vlgmr.msrb.gmra.mxu1 %vm566_vm6, %v754_v5 }
 0x3da   : > { %v632_v6 = vpop.xlane.xlu0 %631 }
 0x3db   : > { %1355 = vrcp.f32 %v632_v6 }
 0x3e1   : > { %v1356_v7 = vpop.eup %1355 }
 0x3e2   : > { %v681_v8 = vmul.f32 %v1356_v7, %v674_v46 }
 0x3e4   : > { %v683_v9 = vpack.c.bf16 %v681_v8, %v681_v8 }
 0x3e6   : > { %686 = vst.msk [vmem:[#allocation2 + $0x4] sm:$0xf] %vm684_vm9, %v683_v9  ;;  %v1337_v9 = vld [vmem:[%s1643_s6] ss:$0 sm:$0xff] }
 0x41c   : > { %v749_v10 = vpop.xlane.xlu1 %748 }
 0x41d   : > { %1357 = vrcp.f32 %v749_v10 }
 0x423   : > { %v1358_v12 = vpop.eup %1357 }
 0x424   : > { %v752_v11 = vpop.xlane.xlu1 %751 }
 0x425   : > { %1359 = vrcp.f32 %v752_v11 }
 0x42b   : > { %v1360_v17 = vpop.eup %1359 }
 0x42d   : > { %v772_v13 = vpop.f32.mrf.mxu3 }
 0x42e   : > { %v799_v14 = vmul.f32 %v1358_v12, %v772_v13 }
 0x430   : > { %v801_v15 = vpack.c.bf16 %v799_v14, %v799_v14 }
 0x431   : > { %v793_v16 = vpop.f32.mrf.mxu1 }
 0x432   : > { %805 = vrot.lane.b32.xlu1 %v801_v15, %s1382_s20  ;;  %v800_v18 = vmul.f32 %v1360_v17, %v793_v16  ;;  %v1338_v15 = vld [vmem:[%s1644_s7] ss:$0 sm:$0xff] }
 0x434   : > { %v802_v20 = vpack.c.bf16 %v800_v18, %v800_v18 }
 0x435   : > { %v774_v19 = vpop.f32.mrf.mxu3 }
 0x439   : > { %v795_v21 = vpop.f32.mrf.mxu1 }
 0x43a   : > { %807 = vrot.lane.b32.xlu1 %v802_v20, %s1382_s20  ;;  %v1310_v20 = vld [vmem:[%s1647_s10 + $0x38] sm:$0xff]  ;;  %v1309_v21 = vld [vmem:[%s1647_s10 + $0x30] sm:$0xff] }
 0x43b   : > { %1079 = vmatpush.bf16.msra.mxu3 %v1310_v20 }
 0x43f   : > { %1080 = vmatpush.bf16.msra.mxu3 %v1309_v21 }
 0x443   : > { %1081 = vmatpush.bf16.msra.mxu3 %v1308_v22 }
 0x4a4   : > { %v806_v23 = vpop.permute.xlu1 %805 }
 0x4a5   : > { %812 = vst.msk [vmem:[#allocation2] sm:$0xf] %vm811_vm10, %v806_v23  ;;  %v1307_v23 = vld [vmem:[%s1647_s10 + $0x20] sm:$0xff] }
 0x4a6   : > { %1082 = vmatpush.bf16.msra.mxu3 %v1307_v23 }
 0x4ac   : > { %v808_v24 = vpop.permute.xlu1 %807 }
 0x4ad   : > { %813 = vst.msk [vmem:[#allocation2 + $0x4] sm:$0xf] %vm811_vm10, %v808_v24  ;;  %v1306_v24 = vld [vmem:[%s1647_s10 + $0x18] sm:$0xff] }
 0x4ae   : > { %1083 = vmatpush.bf16.msra.mxu3 %v1306_v24 }
 0x4b4   : > { %v1293_v25 = vld [vmem:[#allocation2] sm:$0xff] }
 0x4b5   : > { %1218 = vmatmul.msk.bf16.vlgmr.msra.gmra.mxu2 %vm829_vm11, %v1293_v25  ;;  %v1305_v25 = vld [vmem:[%s1647_s10 + $0x10] sm:$0xff] }
 0x4b6   : > { %1084 = vmatpush.bf16.msra.mxu3 %v1305_v25 }
 0x538   : > { %v842_v27 = vpop.f32.mrf.mxu2 }
 0x539   : > { %v847_v28 = vadd.f32 %v1464_v1, %v842_v27  ;;  %v1302_v1 = vld [vmem:[%s1645_s8 + $0x38] sm:$0xff]  ;;  %v1303_v27 = vld [vmem:[%s1647_s10] sm:$0xff] }
 0x53a   : > { %982 = vmatpush.bf16.msrb.mxu0 %v1302_v1 }
 0x53b   : > { %v1554_v29 = vadd.f32 %v1336_v26, %v847_v28  ;;  %v1339_v28 = vld [vmem:[%s1646_s9] ss:$0 sm:$0xff] }
 0x53d   : > { %857 = vadd.xlane.f32.xlu1 %v1554_v29  ;;  %v863_v30 = vmul.f32 %v1554_v29, %v1554_v29 }
 0x53e   : > { %983 = vmatpush.bf16.msrb.mxu0 %v1301_v35 }
 0x53f   : > { %865 = vadd.xlane.f32.xlu0 %v863_v30 }
 0x540   : > { %v844_v31 = vpop.f32.mrf.mxu2 }
 0x541   : > { %v848_v32 = vadd.f32 %v1469_v3, %v844_v31  ;;  %v1300_v3 = vld [vmem:[%s1645_s8 + $0x28] sm:$0xff] }
 0x542   : > { %984 = vmatpush.bf16.msrb.mxu0 %v1300_v3 }
 0x543   : > { %v1560_v33 = vadd.f32 %v1336_v26, %v848_v32  ;;  %v1304_v26 = vld [vmem:[%s1647_s10 + $0x8] sm:$0xff] }
 0x544   : > { %1085 = vmatpush.bf16.msra.mxu3 %v1304_v26 }
 0x545   : > { %859 = vadd.xlane.f32.xlu2 %v1560_v33  ;;  %v864_v34 = vmul.f32 %v1560_v33, %v1560_v33 }
 0x546   : > { %985 = vmatpush.bf16.msrb.mxu0 %v1299_v36 }
 0x548   : > { %1086 = vmatpush.bf16.msra.mxu3 %v1303_v27 }
 0x54a   : > { %986 = vmatpush.bf16.msrb.mxu0 %v1298_v40 }
 0x54d   : > { %867 = vadd.xlane.f32.xlu2 %v864_v34 }
 0x54e   : > { %987 = vmatpush.bf16.msrb.mxu0 %v1297_v44 }
 0x552   : > { %988 = vmatpush.bf16.msrb.mxu0 %v1296_v48 }
 0x556   : > { %989 = vmatpush.bf16.msrb.mxu0 %v1295_v49 }
 0x5b0   : > { %v858_v37 = vpop.xlane.xlu1 %857 }
 0x5b1   : > { %v861_v38 = vmul.f32 0.03125, %v858_v37 }
 0x5b2   : > { %v866_v39 = vpop.xlane.xlu0 %865 }
 0x5b3   : > { %v871_v41 = vmul.f32 %v861_v38, %v861_v38  ;;  %v869_v42 = vmul.f32 0.03125, %v866_v39  ;;  %v877_v6 = vsub.f32 %v1554_v29, %v861_v38 }
 0x5b5   : > { %v873_v43 = vsub.f32 %v869_v42, %v871_v41 }
 0x5b7   : > { %v875_v45 = vmax.f32 %v873_v43, 0.0 }
 0x5b8   : > { %v860_v46 = vpop.xlane.xlu2 %859 }
 0x5b9   : > { %v879_v47 = vadd.f32 1e-05, %v875_v45  ;;  %v862_v50 = vmul.f32 0.03125, %v860_v46 }
 0x5bb   : > { %1361 = vrsqrt.f32 %v879_v47  ;;  %v872_v53 = vmul.f32 %v862_v50, %v862_v50  ;;  %vm887_vm13 = vweird.f32 %v879_v47  ;;  %v878_v11 = vsub.f32 %v1560_v33, %v862_v50 }
 0x5c0   : > { %v868_v51 = vpop.xlane.xlu2 %867 }
 0x5c1   : > { %v1362_v52 = vpop.eup %1361  ;;  %v870_v54 = vmul.f32 0.03125, %v868_v51 }
 0x5c2   : > { %v882_v55 = vmul.f32 %v1362_v52, %v879_v47  ;;  %vm888_vm12 = vweird.f32 %v1362_v52 }
 0x5c3   : > { %v874_v56 = vsub.f32 %v870_v54, %v872_v53  ;;  %vm889_vm14 = vmor %vm887_vm13, %vm888_vm12  ;;  %v1340_v54 = vld [vmem:[%s1648_s11] ss:$0 sm:$0xff] }
 0x5c4   : > { %v883_v57 = vmul.f32 %v1362_v52, %v882_v55 }
 0x5c5   : > { %v876_v58 = vmax.f32 %v874_v56, 0.0 }
 0x5c6   : > { %v884_v60 = vmul.f32 0.5, %v883_v57 }
 0x5c7   : > { %v880_v59 = vadd.f32 1e-05, %v876_v58 }
 0x5c8   : > { %v885_v62 = vsub.f32 1.5, %v884_v60 }
 0x5c9   : > { %1363 = vrsqrt.f32 %v880_v59  ;;  %vm897_vm0 = vweird.f32 %v880_v59 }
 0x5ca   : > { %v886_v0 = vmul.f32 %v1362_v52, %v885_v62 }
 0x5cc   : > { %v890_v4 = vsel %vm889_vm14, %v1362_v52, %v886_v0 }
 0x5cd   : > { %v901_v8 = vmul.f32 %v890_v4, %v877_v6 }
 0x5cf   : > { %v1364_v63 = vpop.eup %1363  ;;  %v906_v14 = vmul.f32 %v1337_v9, %v901_v8 }
 0x5d0   : > { %v892_v61 = vmul.f32 %v1364_v63, %v880_v59  ;;  %vm898_vm15 = vweird.f32 %v1364_v63 }
 0x5d1   : > { %vm899_vm1 = vmor %vm897_vm0, %vm898_vm15  ;;  %v911_v17 = vadd.f32 %v1338_v15, %v906_v14 }
 0x5d2   : > { %v893_v2 = vmul.f32 %v1364_v63, %v892_v61 }
 0x5d4   : > { %v894_v5 = vmul.f32 0.5, %v893_v2 }
 0x5d6   : > { %v895_v7 = vsub.f32 1.5, %v894_v5 }
 0x5d8   : > { %v896_v10 = vmul.f32 %v1364_v63, %v895_v7 }
 0x5da   : > { %v900_v12 = vsel %vm899_vm1, %v1364_v63, %v896_v10 }
 0x5db   : > { %v902_v13 = vmul.f32 %v900_v12, %v878_v11 }
 0x5dd   : > { %v907_v16 = vmul.f32 %v1337_v9, %v902_v13 }
 0x5df   : > { %v912_v18 = vadd.f32 %v1338_v15, %v907_v16 }
 0x5e1   : > { %v929_v19 = vpack.c.bf16 %v912_v18, %v911_v17 }
 0x5e3   : > { %990 = vmatmul.bf16.vlgmr.msrb.gmra.mxu0 %v929_v19 }
 0x660   : > { %v991_v30 = vpop.f32.mrf.mxu0 }
 0x661   : > { %v992_v31 = vadd.f32 %v1339_v28, %v991_v30 }
 0x663   : > { %v998_v32 = vmul.f32 0.044715, %v992_v31  ;;  %v996_v46 = vmul.f32 0.5, %v992_v31 }
 0x665   : > { %v1000_v34 = vmul.f32 %v998_v32, %v992_v31 }
 0x667   : > { %v1002_v1 = vmul.f32 %v1000_v34, %v992_v31 }
 0x668   : > { %v993_v35 = vpop.f32.mrf.mxu0 }
 0x669   : > { %v1004_v3 = vadd.f32 %v1002_v1, %v992_v31  ;;  %v994_v36 = vadd.f32 %v1339_v28, %v993_v35 }
 0x66b   : > { %v999_v37 = vmul.f32 0.044715, %v994_v36  ;;  %v1006_v38 = vmul.f32 0.7978846, %v1004_v3  ;;  %v997_v47 = vmul.f32 0.5, %v994_v36 }
 0x66d   : > { %v1001_v39 = vmul.f32 %v999_v37, %v994_v36  ;;  %1365 = vtanh.f32 %v1006_v38 }
 0x66f   : > { %v1003_v40 = vmul.f32 %v1001_v39, %v994_v36 }
 0x671   : > { %v1005_v41 = vadd.f32 %v1003_v40, %v994_v36 }
 0x673   : > { %v1007_v42 = vmul.f32 0.7978846, %v1005_v41  ;;  %v1366_v43 = vpop.eup %1365 }
 0x674   : > { %v1010_v44 = vadd.f32 1.0, %v1366_v43 }
 0x675   : > { %1367 = vtanh.f32 %v1007_v42 }
 0x676   : > { %v1012_v49 = vmul.f32 %v1010_v44, %v996_v46 }
 0x67b   : > { %v1368_v45 = vpop.eup %1367 }
 0x67c   : > { %v1011_v48 = vadd.f32 1.0, %v1368_v45 }
 0x67e   : > { %v1013_v50 = vmul.f32 %v1011_v48, %v997_v47 }
 0x680   : > { %v1030_v51 = vpack.c.bf16 %v1013_v50, %v1012_v49 }
 0x682   : > { %1087 = vmatmul.bf16.vlgmr.msra.gmra.mxu3 %v1030_v51 }
 0x705   : > { %v1088_v52 = vpop.f32.mrf.mxu3 }
 0x706   : > { %v1093_v53 = vadd.f32 %v1088_v52, %v1554_v29 }
 0x708   : > { %v1099_v57 = vadd.f32 %v1340_v54, %v1093_v53 }
 0x70d   : > { %v1090_v55 = vpop.f32.mrf.mxu3 }
 0x70e   : > { %v1094_v56 = vadd.f32 %v1090_v55, %v1560_v33 }
 0x710   : > { %v1100_v58 = vadd.f32 %v1340_v54, %v1094_v56 }
 0x712   : > { %v1318_v59 = vpack.c.bf16 %v1100_v58, %v1099_v57 }
 0x714   : > { %1319 = vst [vmem:[%s415_s25] sm:$0xff] %v1318_v59  }
 0x715 PF: > { %s22_s21 = sadd.s32 1, %s1375_s21  }
 0x716   : > { %p19_p4 = scmp.ge.s32.totalorder %s22_s21, 4  }
 0x718   :  { %21 = sbr.rel (!%p19_p4) target bundleno = 1 (0x1), region = 98 }

// kernel: _lambda_.11
= control target key start
LH: loop header
LB: loop body
LE: loop exit
PB: predicated region body
PF: predicated region fallthrough
CT: control target
= control target key end

     0   :  { %vm25_vm0 = vcmask 1041408   ;;  %s300_s0 = inlined_call_operand.vmem [shape: bf16[2,128], index: 0, kind: input, shape index: {}]   ;;  %s301_s1 = inlined_call_operand.vmem [shape: f32[1,128], index: 1, kind: input, shape index: {}]   ;;  %s302_s2 = inlined_call_operand.vmem [shape: f32[1,128], index: 2, kind: input, shape index: {}]   ;;  %s303_s3 = inlined_call_operand.vmem [shape: bf16[128,128], index: 3, kind: input, shape index: {}]   ;;  %s304_s4 = inlined_call_operand.vmem [shape: f32[1,128], index: 4, kind: input, shape index: {}]   ;;  %s305_s5 = inlined_call_operand.hbm [shape: f32[2,128], index: 5, kind: output, shape index: {}]  }
   0x1   :  { %v21_v0 = vld [vmem:[%s300_s0] sm:$0x1] }
   0x2   :  { %v22_v1 = vunpack.c.l.bf16 %v21_v0 }
   0x3   :  { %10 = vsyncpa [#allocation3], 0  ;;  %v197_v5 = vld [vmem:[%s303_s3 + $0x38] sm:$0xff]  ;;  %v196_v6 = vld [vmem:[%s303_s3 + $0x30] sm:$0xff]  ;;  %s230_s15 = smov [#allocation2]  }
   0x4   :  { %v26_v2 = vsel %vm25_vm0, %v22_v1, 0.0  ;;  %v30_v3 = vmul.f32 %v22_v1, %v22_v1  ;;  %128 = vmatpush.bf16.msra.mxu0 %v197_v5  ;;  %v195_v7 = vld [vmem:[%s303_s3 + $0x28] sm:$0xff]  ;;  %v194_v8 = vld [vmem:[%s303_s3 + $0x20] sm:$0xff]  ;;  %v193_v9 = vld [vmem:[%s303_s3 + $0x18] sm:$0xff]  ;;  %s147_s16 = sshll.u32 %s230_s15, 4  ;;  %s148_s16 = int_to_ptr.vmem [resolvable:$true] %s147_s16 }
   0x5   :  { %27 = vadd.xlane.f32.xlu0 %v26_v2  ;;  %v192_v10 = vld [vmem:[%s303_s3 + $0x10] sm:$0xff]  ;;  %v191_v12 = vld [vmem:[%s303_s3 + $0x8] sm:$0xff]  ;;  %v190_v13 = vld [vmem:[%s303_s3] sm:$0xff] }
   0x6   :  { %v31_v4 = vsel %vm25_vm0, %v30_v3, 0.0  ;;  %v199_v28 = vld [vmem:[%s301_s1] ss:$0 sm:$0xff]  ;;  %s149_s1 = sshll.u32 %s305_s5, 4  ;;  %s150_s1 = int_to_ptr.hbm [resolvable:$true] %s149_s1 }
   0x7   :  { %v200_v31 = vld [vmem:[%s302_s2] ss:$0 sm:$0xff] }
   0x8   :  { %129 = vmatpush.bf16.msra.mxu0 %v196_v6  ;;  %v201_v35 = vld [vmem:[%s304_s4] ss:$0 sm:$0xff] }
   0xc   :  { %130 = vmatpush.bf16.msra.mxu0 %v195_v7 }
   0xd   :  { %32 = vadd.xlane.f32.xlu0 %v31_v4 }
  0x10   :  { %131 = vmatpush.bf16.msra.mxu0 %v194_v8 }
  0x14   :  { %132 = vmatpush.bf16.msra.mxu0 %v193_v9 }
  0x18   :  { %133 = vmatpush.bf16.msra.mxu0 %v192_v10 }
  0x1c   :  { %134 = vmatpush.bf16.msra.mxu0 %v191_v12 }
  0x20   :  { %135 = vmatpush.bf16.msra.mxu0 %v190_v13 }
  0x78   :  { %v28_v11 = vpop.xlane.xlu0 %27 }
  0x79   :  { %v29_v14 = vmul.f32 0.03125, %v28_v11 }
  0x7b   :  { %v35_v16 = vmul.f32 %v29_v14, %v29_v14  ;;  %v38_v27 = vsub.f32 %v22_v1, %v29_v14 }
  0x80   :  { %v33_v15 = vpop.xlane.xlu0 %32 }
  0x81   :  { %v34_v17 = vmul.f32 0.03125, %v33_v15 }
  0x83   :  { %v36_v18 = vsub.f32 %v34_v17, %v35_v16 }
  0x85   :  { %v37_v19 = vmax.f32 %v36_v18, 0.0 }
  0x87   :  { %v39_v20 = vadd.f32 1e-05, %v37_v19 }
  0x89   :  { %202 = vrsqrt.f32 %v39_v20  ;;  %vm46_vm2 = vweird.f32 %v39_v20 }
  0x8f   :  { %v203_v21 = vpop.eup %202 }
  0x90   :  { %v41_v22 = vmul.f32 %v203_v21, %v39_v20  ;;  %vm47_vm1 = vweird.f32 %v203_v21 }
  0x91   :  { %vm48_vm3 = vmor %vm46_vm2, %vm47_vm1 }
  0x92   :  { %v42_v23 = vmul.f32 %v203_v21, %v41_v22 }
  0x94   :  { %v43_v24 = vmul.f32 0.5, %v42_v23 }
  0x96   :  { %v44_v25 = vsub.f32 1.5, %v43_v24 }
  0x98   :  { %v45_v26 = vmul.f32 %v203_v21, %v44_v25 }
  0x9a   :  { %v49_v29 = vsel %vm48_vm3, %v203_v21, %v45_v26 }
  0x9b   :  { %v50_v30 = vmul.f32 %v49_v29, %v38_v27 }
  0x9d   :  { %v54_v32 = vmul.f32 %v199_v28, %v50_v30 }
  0x9f   :  { %v58_v33 = vadd.f32 %v200_v31, %v54_v32 }
  0xa1   :  { %v75_v34 = vpack.c.bf16 %v58_v33, %v58_v33 }
  0xa3   :  { %136 = vmatmul.bf16.vlgmr.msra.gmra.mxu0 %v75_v34 }
 0x120   :  { %v137_v36 = vpop.f32.mrf.mxu0 }
 0x121   :  { %v138_v37 = vadd.f32 %v201_v35, %v137_v36 }
 0x123   :  { %141 = vst [vmem:[#allocation2] sm:$0x3] %v138_v37 }
 0x124   :  { %152 = dma.vmem_to_hbm [thread:$0]  %s148_s16, 32, %s150_s1, [#allocation3]  }
 0x128   :  { %v139_v38 = vpop.f32.mrf.mxu0 }
 0x129   :  { %228 = dma.done.wait [#allocation3], 32  }
 0x12a   :  { %229 = vsyncadd [#allocation3], 4294967264 }
 0x12b   :  { %157 = vsyncpa [#allocation3], 1 }

// kernel: _lambda_.9
= control target key start
LH: loop header
LB: loop body
LE: loop exit
PB: predicated region body
PF: predicated region fallthrough
CT: control target
= control target key end

     0   :  { %s1202_s21 = smov 0   ;;  %s1346_s0 = inlined_call_operand.vmem [shape: bf16[2,8,128], index: 0, kind: input, shape index: {}]   ;;  %s1347_s1 = inlined_call_operand.vmem [shape: f32[1,128], index: 1, kind: input, shape index: {}]   ;;  %s1348_s2 = inlined_call_operand.vmem [shape: f32[1,128], index: 2, kind: input, shape index: {}]   ;;  %s1349_s3 = inlined_call_operand.vmem [shape: bf16[128,48], index: 3, kind: input, shape index: {}]   ;;  %s1350_s4 = inlined_call_operand.vmem [shape: bf16[16,128], index: 4, kind: input, shape index: {}]   ;;  %s1351_s5 = inlined_call_operand.vmem [shape: f32[1,128], index: 5, kind: input, shape index: {}]   ;;  %s1352_s6 = inlined_call_operand.vmem [shape: f32[1,128], index: 6, kind: input, shape index: {}]   ;;  %s1353_s7 = inlined_call_operand.vmem [shape: f32[1,128], index: 7, kind: input, shape index: {}]   ;;  %s1354_s8 = inlined_call_operand.vmem [shape: bf16[128,128], index: 8, kind: input, shape index: {}]   ;;  %s1355_s9 = inlined_call_operand.vmem [shape: f32[1,128], index: 9, kind: input, shape index: {}]   ;;  %s1356_s10 = inlined_call_operand.vmem [shape: bf16[128,128], index: 10, kind: input, shape index: {}]   ;;  %s1357_s11 = inlined_call_operand.vmem [shape: f32[1,128], index: 11, kind: input, shape index: {}]   ;;  %s1358_s12 = inlined_call_operand.vmem [shape: bf16[2,8,128], index: 12, kind: output, shape index: {}]  }
   0x1 LB: > { %s949_s22 = sadd.s32 4294967295, %s1129_s21   ;;  %p953_p0 = scmp.ge.s32.totalorder %s1129_s21, 1  ;;  %s1129_s21 = sphi %s1202_s21, %s22_s21  }
   0x2   : > { %p361_p1 = scmp.lt.s32.totalorder %s1129_s21, 3 }
   0x4   : > { %p362_p2 = pnand %p953_p0, %p361_p1 }
   0x5   : > { %p401_p3 = scmp.lt.s32.totalorder (!%p362_p2), %s949_s22, 1  ;;  %s1131_s14 = smov (!%p362_p2), 88  }
   0x6   : > { %365 = sbr.rel (%p362_p2) target bundleno = 1514 (0x5ea), region = 68  ;;  %s1132_s15 = smov (!%p362_p2), 112  }
   0x7   : > { %s1133_s16 = smov (!%p362_p2), 104   ;;  %s1134_s17 = smov (!%p362_p2), 96  }
   0x8   : > { %s1135_s18 = smov (!%p362_p2), 120   ;;  %s1136_s24 = smov (!%p362_p2), 8  }
   0xb   : > { %s1360_s22 = smov (!%p401_p3, %s949_s22), 1  ;;  %v1070_v3 = vld [vmem:[%s1349_s3 + $0x38] sm:$0xff]  ;;  %v1069_v4 = vld [vmem:[%s1349_s3 + $0x30] sm:$0xff]  ;;  %v1068_v5 = vld [vmem:[%s1349_s3 + $0x28] sm:$0xff]  ;;  %vm529_vm3 = vcmask 64512   ;;  %vm568_vm4 = vcmask 1043456   ;;  %v549_v47 = vlaneseq }
   0xc   : > { %s954_s23 = sshll.u32 %s1360_s22, 2  ;;  %510 = vmatpush.bf16.msra.mxu0 %v1070_v3  ;;  %v1067_v6 = vld [vmem:[%s1349_s3 + $0x20] sm:$0xff]  ;;  %v1066_v7 = vld [vmem:[%s1349_s3 + $0x18] sm:$0xff]  ;;  %v1065_v8 = vld [vmem:[%s1349_s3 + $0x10] sm:$0xff]  ;;  %vm588_vm6 = vcmask 60416   ;;  %vm652_vm7 = vcmask 126016  }
   0xd   : > { %s404_s26 = scalar_lea.vmem %s1346_s0, %s954_s23  ;;  %v1064_v10 = vld [vmem:[%s1349_s3 + $0x8] sm:$0xff]  ;;  %v1063_v11 = vld [vmem:[%s1349_s3] sm:$0xff]  ;;  %v550_v48 = vand.u32 127, %v549_v47  ;;  %vm663_vm8 = vcmask 130048  }
   0xe   : > { %v410_v0 = vld [vmem:[%s404_s26] sm:$0xf] }
   0xf   : > { %v1218_v1 = vunpack.c.l.bf16 %v410_v0  ;;  %v1102_v26 = vld [vmem:[%s1347_s1] ss:$0 sm:$0xff]  ;;  %vm551_vm5 = vcmp.lt.s32.totalorder %v550_v48, 3 }
  0x10   : > { %511 = vmatpush.bf16.msra.mxu0 %v1069_v4  ;;  %v1103_v29 = vld [vmem:[%s1348_s2] ss:$0 sm:$0xff] }
  0x11   : > { %414 = vadd.xlane.f32.xlu0 %v1218_v1  ;;  %v417_v2 = vmul.f32 %v1218_v1, %v1218_v1 }
  0x14   : > { %512 = vmatpush.bf16.msra.mxu0 %v1068_v5 }
  0x18   : > { %513 = vmatpush.bf16.msra.mxu0 %v1067_v6 }
  0x19   : > { %418 = vadd.xlane.f32.xlu0 %v417_v2 }
  0x1c   : > { %514 = vmatpush.bf16.msra.mxu0 %v1066_v7 }
  0x20   : > { %515 = vmatpush.bf16.msra.mxu0 %v1065_v8 }
  0x24   : > { %516 = vmatpush.bf16.msra.mxu0 %v1064_v10 }
  0x28   : > { %517 = vmatpush.bf16.msra.mxu0 %v1063_v11 }
  0x84   : > { %v415_v9 = vpop.xlane.xlu0 %414 }
  0x85   : > { %v416_v12 = vmul.f32 0.03125, %v415_v9 }
  0x87   : > { %v421_v14 = vmul.f32 %v416_v12, %v416_v12  ;;  %v424_v25 = vsub.f32 %v1218_v1, %v416_v12  ;;  %v1071_v12 = vld [vmem:[%s1350_s4] sm:$0xff] }
  0x8c   : > { %v419_v13 = vpop.xlane.xlu0 %418 }
  0x8d   : > { %v420_v15 = vmul.f32 0.03125, %v419_v13 }
  0x8f   : > { %v422_v16 = vsub.f32 %v420_v15, %v421_v14 }
  0x91   : > { %v423_v17 = vmax.f32 %v422_v16, 0.0 }
  0x93   : > { %v425_v18 = vadd.f32 1e-05, %v423_v17 }
  0x95   : > { %1109 = vrsqrt.f32 %v425_v18  ;;  %vm432_vm1 = vweird.f32 %v425_v18 }
  0x9b   : > { %v1110_v19 = vpop.eup %1109 }
  0x9c   : > { %v427_v20 = vmul.f32 %v1110_v19, %v425_v18  ;;  %vm433_vm0 = vweird.f32 %v1110_v19 }
  0x9d   : > { %vm434_vm2 = vmor %vm432_vm1, %vm433_vm0 }
  0x9e   : > { %v428_v21 = vmul.f32 %v1110_v19, %v427_v20 }
  0xa0   : > { %v429_v22 = vmul.f32 0.5, %v428_v21  ;;  %v1104_v21 = vld [vmem:[%s1351_s5] ss:$0 sm:$0xff] }
  0xa2   : > { %v430_v23 = vsub.f32 1.5, %v429_v22 }
  0xa4   : > { %v431_v24 = vmul.f32 %v1110_v19, %v430_v23 }
  0xa6   : > { %v435_v27 = vsel %vm434_vm2, %v1110_v19, %v431_v24 }
  0xa7   : > { %v436_v28 = vmul.f32 %v435_v27, %v424_v25  ;;  %v1079_v27 = vld [vmem:[%s1354_s8 + $0x38] sm:$0xff] }
  0xa9   : > { %v440_v30 = vmul.f32 %v1102_v26, %v436_v28  ;;  %v1078_v28 = vld [vmem:[%s1354_s8 + $0x30] sm:$0xff] }
  0xab   : > { %v444_v31 = vadd.f32 %v1103_v29, %v440_v30  ;;  %v1076_v29 = vld [vmem:[%s1354_s8 + $0x20] sm:$0xff]  ;;  %v1075_v30 = vld [vmem:[%s1354_s8 + $0x18] sm:$0xff] }
  0xad   : > { %v461_v32 = vpack.c.bf16 %v444_v31, %v444_v31  ;;  %v1074_v31 = vld [vmem:[%s1354_s8 + $0x10] sm:$0xff] }
  0xaf   : > { %518 = vmatmul.bf16.vlgmr.msra.gmra.mxu0 %v461_v32 }
 0x12c   : > { %v519_v33 = vpop.f32.mrf.mxu0 }
 0x12d   : > { %v523_v34 = vpack.c.bf16 %v519_v33, %v519_v33  ;;  %v1073_v33 = vld [vmem:[%s1354_s8 + $0x8] sm:$0xff] }
 0x12f   : > { %v525_v35 = vunpack.c.l.b16 %v523_v34 }
 0x131   : > { %v526_v36 = vpack.c.b16 %v525_v35, %v525_v35 }
 0x133   : > { %624 = vrot.lane.b32.xlu0 %v526_v36, %s1131_s14  ;;  %527 = vrot.lane.b32.xlu2 %v526_v36, %s1132_s15 }
 0x134   : > { %592 = vrot.lane.b32.xlu1 %v526_v36, %s1133_s16  ;;  %v521_v37 = vpop.f32.mrf.mxu0 }
 0x13b   : > { %563 = vrot.lane.b32.xlu0 %v526_v36, %s1134_s17 }
 0x13c   : > { %590 = vrot.lane.b32.xlu1 %v526_v36, %s1135_s18 }
 0x18d   : > { %v528_v38 = vpop.permute.xlu2 %527 }
 0x18e   : > { %v534_v39 = vsel %vm529_vm3, %v528_v38, 0 }
 0x18f   : > { %543 = vmatpush.bf16.xpose.msra.mxu1 %v534_v39 }
 0x196   : > { %988 = vmatmul.msk.bf16.vlgmr.msra.gmra.mxu1 %vm529_vm3, %v523_v34  ;;  %v1072_v34 = vld [vmem:[%s1354_s8] sm:$0xff] }
 0x1a5   : > { %v625_v40 = vpop.permute.xlu0 %624 }
 0x1a6   : > { %v593_v41 = vpop.permute.xlu1 %592  ;;  %v630_v42 = vsel %vm568_vm4, %v625_v40, 0  ;;  %v1087_v40 = vld [vmem:[%s1356_s10 + $0x38] sm:$0xff] }
 0x1a7   : > { %v598_v43 = vsel %vm529_vm3, %v593_v41, 0  ;;  %639 = vmatpush.bf16.msra.mxu2 %v630_v42  ;;  %v1086_v42 = vld [vmem:[%s1356_s10 + $0x30] sm:$0xff] }
 0x1a8   : > { %607 = vmatpush.bf16.xpose.msra.mxu3 %v598_v43 }
 0x1ab   : > { %875 = vmatpush.bf16.msrb.mxu2 %v1087_v40 }
 0x1ad   : > { %v564_v44 = vpop.permute.xlu0 %563 }
 0x1ae   : > { %v591_v45 = vpop.permute.xlu1 %590  ;;  %v570_v46 = vsel %vm568_vm4, %v564_v44, 0 }
 0x1af   : > { %990 = vmatmul.msk.bf16.vlgmr.msra.gmra.mxu3 %vm529_vm3, %v591_v45  ;;  %579 = vmatpush.bf16.msrb.mxu1 %v570_v46 }
 0x1b0   : > { %788 = vmatpush.bf16.msrb.mxu3 %v1079_v27  ;;  %876 = vmatpush.bf16.msrb.mxu2 %v1086_v42 }
 0x1b3   : > { %674 = vmatpush.bf16.msra.mxu1 %v1071_v12 }
 0x1b4   : > { %789 = vmatpush.bf16.msrb.mxu3 %v1078_v28 }
 0x213   : > { %v545_v49 = vpop.f32.mrf.mxu1 }
 0x214   : > { %v552_v50 = vsel %vm551_vm5, %v545_v49, -1e+30 }
 0x215   : > { %v553_v51 = vsel %vm529_vm3, %v552_v50, -inf }
 0x216   : > { %554 = vmax.xlane.f32.xlu1 %v553_v51  ;;  %v1105_v51 = vld [vmem:[%s1352_s6] ss:$0 sm:$0xff] }
 0x21b   : > { %v547_v52 = vpop.f32.mrf.mxu1 }
 0x232   : > { %v609_v53 = vpop.f32.mrf.mxu3 }
 0x233   : > { %v613_v54 = vsel %vm551_vm5, %v609_v53, -1e+30 }
 0x234   : > { %v614_v55 = vsel %vm529_vm3, %v613_v54, -inf }
 0x235   : > { %615 = vmax.xlane.f32.xlu2 %v614_v55 }
 0x23a   : > { %v611_v56 = vpop.f32.mrf.mxu3 }
 0x289   : > { %v555_v57 = vpop.xlane.xlu1 %554 }
 0x28a   : > { %v556_v58 = vsub.f32 %v552_v50, %v555_v57 }
 0x28c   : > { %v557_v59 = vmul.f32 1.442695, %v556_v58  ;;  %v1085_v58 = vld [vmem:[%s1356_s10 + $0x28] sm:$0xff] }
 0x28d   : > { %877 = vmatpush.bf16.msrb.mxu2 %v1085_v58 }
 0x28e   : > { %1111 = vpow2.f32 %v557_v59  ;;  %v1084_v59 = vld [vmem:[%s1356_s10 + $0x20] sm:$0xff] }
 0x291   : > { %878 = vmatpush.bf16.msrb.mxu2 %v1084_v59 }
 0x294   : > { %v1112_v60 = vpop.eup %1111 }
 0x295   : > { %v559_v61 = vsel %vm529_vm3, %v1112_v60, 0.0  ;;  %v562_v62 = vpack.c.bf16 %v1112_v60, %v1112_v60  ;;  %v1083_v60 = vld [vmem:[%s1356_s10 + $0x18] sm:$0xff] }
 0x296   : > { %560 = vadd.xlane.f32.xlu2 %v559_v61  ;;  %879 = vmatpush.bf16.msrb.mxu2 %v1083_v60  ;;  %v1082_v61 = vld [vmem:[%s1356_s10 + $0x10] sm:$0xff] }
 0x297   : > { %989 = vmatmul.msk.bf16.vlgmr.msrb.gmra.mxu1 %vm529_vm3, %v562_v62  ;;  %v1081_v62 = vld [vmem:[%s1356_s10 + $0x8] sm:$0xff] }
 0x29a   : > { %880 = vmatpush.bf16.msrb.mxu2 %v1082_v61 }
 0x29e   : > { %881 = vmatpush.bf16.msrb.mxu2 %v1081_v62 }
 0x2a8   : > { %v616_v63 = vpop.xlane.xlu2 %615 }
 0x2a9   : > { %v617_v0 = vsub.f32 %v613_v54, %v616_v63  ;;  %v1106_v54 = vld [vmem:[%s1353_s7] ss:$0 sm:$0xff] }
 0x2aa   : > { %v1080_v63 = vld [vmem:[%s1356_s10] sm:$0xff] }
 0x2ab   : > { %v618_v2 = vmul.f32 1.442695, %v617_v0  ;;  %882 = vmatpush.bf16.msrb.mxu2 %v1080_v63  ;;  %v1107_v0 = vld [vmem:[%s1355_s9] ss:$0 sm:$0xff] }
 0x2ad   : > { %1113 = vpow2.f32 %v618_v2 }
 0x2b3   : > { %v1114_v3 = vpop.eup %1113 }
 0x2b4   : > { %v620_v4 = vsel %vm529_vm3, %v1114_v3, 0.0  ;;  %v623_v5 = vpack.c.bf16 %v1114_v3, %v1114_v3 }
 0x2b5   : > { %621 = vadd.xlane.f32.xlu0 %v620_v4 }
 0x2b6   : > { %991 = vmatmul.msk.bf16.vlgmr.msra.gmra.mxu2 %vm529_vm3, %v623_v5 }
 0x309   : > { %v561_v6 = vpop.xlane.xlu2 %560 }
 0x30a   : > { %1115 = vrcp.f32 %v561_v6 }
 0x310   : > { %v1116_v7 = vpop.eup %1115 }
 0x314   : > { %v581_v8 = vpop.f32.mrf.mxu1 }
 0x315   : > { %v586_v9 = vmul.f32 %v1116_v7, %v581_v8 }
 0x317   : > { %v587_v10 = vpack.c.bf16 %v586_v9, %v586_v9 }
 0x319   : > { %589 = vst.msk [vmem:[#allocation2] sm:$0xf] %vm588_vm6, %v587_v10 }
 0x31c   : > { %v583_v11 = vpop.f32.mrf.mxu1 }
 0x328   : > { %v622_v13 = vpop.xlane.xlu0 %621 }
 0x329   : > { %1117 = vrcp.f32 %v622_v13 }
 0x32f   : > { %v1118_v14 = vpop.eup %1117 }
 0x339   : > { %v641_v15 = vpop.f32.mrf.mxu2 }
 0x33a   : > { %v646_v16 = vmul.f32 %v1118_v14, %v641_v15  ;;  %v1108_v15 = vld [vmem:[%s1357_s11] ss:$0 sm:$0xff] }
 0x33c   : > { %v647_v17 = vpack.c.bf16 %v646_v16, %v646_v16 }
 0x33e   : > { %649 = vrot.lane.b32.xlu2 %v647_v17, %s1136_s24  ;;  %s408_s24 = scalar_lea.vmem %s1358_s12, %s954_s23 }
 0x341   : > { %v643_v18 = vpop.f32.mrf.mxu2 }
 0x398   : > { %v650_v19 = vpop.permute.xlu2 %649 }
 0x399   : > { %653 = vst.msk [vmem:[#allocation2] sm:$0xf] %vm652_vm7, %v650_v19 }
 0x3a0   : > { %v654_v20 = vld [vmem:[#allocation2] sm:$0xf] }
 0x3a1   : > { %996 = vmatmul.msk.bf16.vlgmr.msra.gmra.mxu1 %vm663_vm8, %v654_v20 }
 0x41e   : > { %v676_v22 = vpop.f32.mrf.mxu1 }
 0x41f   : > { %v680_v23 = vadd.f32 %v676_v22, %v1218_v1  ;;  %v1077_v1 = vld [vmem:[%s1354_s8 + $0x28] sm:$0xff] }
 0x420   : > { %790 = vmatpush.bf16.msrb.mxu3 %v1077_v1 }
 0x421   : > { %v1271_v24 = vadd.f32 %v1104_v21, %v680_v23 }
 0x423   : > { %688 = vadd.xlane.f32.xlu1 %v1271_v24  ;;  %v691_v26 = vmul.f32 %v1271_v24, %v1271_v24 }
 0x424   : > { %791 = vmatpush.bf16.msrb.mxu3 %v1076_v29 }
 0x426   : > { %v678_v25 = vpop.f32.mrf.mxu1 }
 0x428   : > { %792 = vmatpush.bf16.msrb.mxu3 %v1075_v30 }
 0x42b   : > { %692 = vadd.xlane.f32.xlu1 %v691_v26 }
 0x42c   : > { %793 = vmatpush.bf16.msrb.mxu3 %v1074_v31 }
 0x430   : > { %794 = vmatpush.bf16.msrb.mxu3 %v1073_v33 }
 0x434   : > { %795 = vmatpush.bf16.msrb.mxu3 %v1072_v34 }
 0x496   : > { %v689_v32 = vpop.xlane.xlu1 %688 }
 0x497   : > { %v690_v35 = vmul.f32 0.03125, %v689_v32 }
 0x499   : > { %v695_v37 = vmul.f32 %v690_v35, %v690_v35  ;;  %v698_v50 = vsub.f32 %v1271_v24, %v690_v35 }
 0x49e   : > { %v693_v36 = vpop.xlane.xlu1 %692 }
 0x49f   : > { %v694_v38 = vmul.f32 0.03125, %v693_v36 }
 0x4a1   : > { %v696_v39 = vsub.f32 %v694_v38, %v695_v37 }
 0x4a3   : > { %v697_v41 = vmax.f32 %v696_v39, 0.0 }
 0x4a5   : > { %v699_v43 = vadd.f32 1e-05, %v697_v41 }
 0x4a7   : > { %1119 = vrsqrt.f32 %v699_v43  ;;  %vm706_vm10 = vweird.f32 %v699_v43 }
 0x4ad   : > { %v1120_v44 = vpop.eup %1119 }
 0x4ae   : > { %v701_v45 = vmul.f32 %v1120_v44, %v699_v43  ;;  %vm707_vm9 = vweird.f32 %v1120_v44 }
 0x4af   : > { %vm708_vm11 = vmor %vm706_vm10, %vm707_vm9 }
 0x4b0   : > { %v702_v46 = vmul.f32 %v1120_v44, %v701_v45 }
 0x4b2   : > { %v703_v47 = vmul.f32 0.5, %v702_v46 }
 0x4b4   : > { %v704_v48 = vsub.f32 1.5, %v703_v47 }
 0x4b6   : > { %v705_v49 = vmul.f32 %v1120_v44, %v704_v48 }
 0x4b8   : > { %v709_v52 = vsel %vm708_vm11, %v1120_v44, %v705_v49 }
 0x4b9   : > { %v710_v53 = vmul.f32 %v709_v52, %v698_v50 }
 0x4bb   : > { %v714_v55 = vmul.f32 %v1105_v51, %v710_v53 }
 0x4bd   : > { %v718_v56 = vadd.f32 %v1106_v54, %v714_v55 }
 0x4bf   : > { %v735_v57 = vpack.c.bf16 %v718_v56, %v718_v56 }
 0x4c1   : > { %796 = vmatmul.bf16.vlgmr.msrb.gmra.mxu3 %v735_v57 }
 0x544   : > { %v797_v2 = vpop.f32.mrf.mxu3 }
 0x545   : > { %v798_v3 = vadd.f32 %v1107_v0, %v797_v2 }
 0x547   : > { %v802_v4 = vmul.f32 0.044715, %v798_v3  ;;  %v801_v11 = vmul.f32 0.5, %v798_v3 }
 0x549   : > { %v803_v5 = vmul.f32 %v802_v4, %v798_v3 }
 0x54b   : > { %v804_v6 = vmul.f32 %v803_v5, %v798_v3 }
 0x54c   : > { %v799_v7 = vpop.f32.mrf.mxu3 }
 0x54d   : > { %v805_v8 = vadd.f32 %v804_v6, %v798_v3 }
 0x54f   : > { %v806_v9 = vmul.f32 0.7978846, %v805_v8 }
 0x551   : > { %1121 = vtanh.f32 %v806_v9 }
 0x557   : > { %v1122_v10 = vpop.eup %1121 }
 0x558   : > { %v808_v12 = vadd.f32 1.0, %v1122_v10 }
 0x55a   : > { %v809_v13 = vmul.f32 %v808_v12, %v801_v11 }
 0x55c   : > { %v826_v14 = vpack.c.bf16 %v809_v13, %v809_v13 }
 0x55e   : > { %883 = vmatmul.bf16.vlgmr.msrb.gmra.mxu2 %v826_v14 }
 0x5e1   : > { %v884_v16 = vpop.f32.mrf.mxu2 }
 0x5e2   : > { %v888_v17 = vadd.f32 %v884_v16, %v1271_v24 }
 0x5e4   : > { %v893_v18 = vadd.f32 %v1108_v15, %v888_v17 }
 0x5e6   : > { %v894_v19 = vpack.c.bf16 %v893_v18, %v893_v18 }
 0x5e8   : > { %895 = vst [vmem:[%s408_s24] sm:$0xf] %v894_v19 }
 0x5e9   : > { %v886_v20 = vpop.f32.mrf.mxu2 }
 0x5ea PF: > { %s22_s21 = sadd.s32 1, %s1129_s21  }
 0x5eb   : > { %p19_p4 = scmp.ge.s32.totalorder %s22_s21, 4  }
 0x5ed   :  { %21 = sbr.rel (!%p19_p4) target bundleno = 1 (0x1), region = 98 }

</bundles_post_ra>
